<compile_context>
chip_gen: v7x
topology: tpu7x:2x2x1
jax: 0.10.0
libtpu: 0.0.40
codegen_flags: <defaults>
</compile_context>

<pallas_src>
import jax
import jax.numpy as jnp
import numpy as np
from jax import lax
from jax.experimental import pallas as pl
from jax.experimental.pallas import tpu as pltpu


# ----------------------------------------------------------------------------
# Pallas kernel: all LSTM layers + FC in one invocation (no grid)
# ----------------------------------------------------------------------------
def _fused_lstm_fc_kernel(x_ref, wih0_ref, wihr_ref, whh_ref, b_ref,
                          wfc_ref, bfc_ref, out_ref, pre_sc, hid_sc):
    """Whole LSTMModel.forward in one kernel invocation.

    x_ref   : (T*B, D)            time-major input, flattened over (T, B)
    wih0_ref: (D, 4H)             layer-0 W_ih^T, gate order (i, f, o, g)
    wihr_ref: (max(L-1,1), H, 4H) layers 1..L-1 W_ih^T (placeholder row if L==1)
    whh_ref : (L, H, 4H)          per-layer W_hh^T
    b_ref   : (L, 1, 4H)          per-layer b_ih + b_hh, gate order (i, f, o, g)
    wfc_ref : (H, O)              final Linear weight (pre-transposed)
    bfc_ref : (1, O)              final Linear bias
    out_ref : (B, O)              y = fc(last_layer_hidden[T-1])
    pre_sc  : VMEM (T*B, 4H) f32  hoisted input-to-hidden pre-activations
    hid_sc  : VMEM (T*B, H)  f32  current layer's hidden sequence (next layer input)
    """
    B = out_ref.shape[0]
    TB = x_ref.shape[0]
    T = TB // B
    L = whh_ref.shape[0]
    H = whh_ref.shape[2] // 4

    h_last = jnp.zeros((B, H), jnp.float32)
    for layer in range(L):                       # static Python loop over layers
        w_hh = whh_ref[layer]                    # (H, 4H), loaded once per layer
        b_l = b_ref[layer]                       # (1, 4H)

        # Hoisted input GEMM: one (T*B, in) x (in, 4H) matmul per layer, bias
        # folded in so it is off the recurrent dependency chain.
        if layer == 0:
            pre_sc[...] = (
                jnp.dot(x_ref[...], wih0_ref[...],
                        preferred_element_type=jnp.float32) + b_l
            )
        else:
            pre_sc[...] = (
                jnp.dot(hid_sc[...], wihr_ref[layer - 1],
                        preferred_element_type=jnp.float32) + b_l
            )

        store_seq = layer < L - 1                # last layer only needs h at t=T-1

        def step(t, carry, w_hh=w_hh, store_seq=store_seq):
            h, c = carry
            row = pl.multiple_of(t * B, B)       # B is a sublane multiple
            gates = pre_sc[pl.ds(row, B), :] + jnp.dot(
                h, w_hh, preferred_element_type=jnp.float32
            )                                    # (B, 4H) in gate order (i,f,o,g)
            ifo = jax.nn.sigmoid(gates[:, : 3 * H])   # one contiguous sigmoid slab
            g = jnp.tanh(gates[:, 3 * H:])
            i = ifo[:, :H]
            f = ifo[:, H:2 * H]
            o = ifo[:, 2 * H:3 * H]
            c = f * c + i * g
            h = o * jnp.tanh(c)
            if store_seq:
                hid_sc[pl.ds(row, B), :] = h     # next layer's input sequence
            return h, c

        init = (jnp.zeros((B, H), jnp.float32), jnp.zeros((B, H), jnp.float32))
        h_last, _ = lax.fori_loop(0, T, step, init, unroll=min(T, 8))

    out_ref[...] = (
        jnp.dot(h_last, wfc_ref[...], preferred_element_type=jnp.float32)
        + bfc_ref[...]
    ).astype(out_ref.dtype)


# ----------------------------------------------------------------------------
# Wrapper
# ----------------------------------------------------------------------------
def lstm_model_forward(params, x_btd):
    """Equivalent of LSTMModel.forward: x (B, T, input_size) -> (B, output_size)."""
    wih0_t = params["w_ih0_t"]
    wihr_t = params["w_ihr_t"]
    whh_t = params["w_hh_t"]
    b_stk = params["b_stk"]
    wfc_t = params["w_fc_t"]
    bfc = params["b_fc"]

    L = whh_t.shape[0]
    H = whh_t.shape[2] // 4
    O = wfc_t.shape[1]
    B, T, D = x_btd.shape

    # Pad batch to a sublane multiple (8 for f32) so per-step work is full-vreg.
    B_pad = ((max(B, 1) + 7) // 8) * 8
    x_tbd = jnp.transpose(x_btd, (1, 0, 2)).astype(jnp.float32)   # (T, B, D)
    if B_pad > B:
        x_tbd = jnp.pad(x_tbd, ((0, 0), (0, B_pad - B), (0, 0)))
    x_2d = x_tbd.reshape(T * B_pad, D)                            # (T*B_pad, D)

    flops = (
        2 * T * B_pad * D * 4 * H                 # layer-0 input GEMM
        + (L - 1) * 2 * T * B_pad * H * 4 * H     # layers 1.. input GEMMs
        + L * 2 * T * B_pad * H * 4 * H           # recurrent matmuls
        + 2 * B_pad * H * O                       # final FC
    )
    transcendentals = L * T * B_pad * 5 * H
    operand_bytes = 4 * (
        x_2d.size + wih0_t.size + wihr_t.size + whh_t.size
        + b_stk.size + wfc_t.size + bfc.size + B_pad * O
    )
    scratch_bytes = 4 * (T * B_pad * 4 * H + T * B_pad * H)
    # Default scoped VMEM is only 16/32 MiB; size the limit from the actual
    # footprint (double-buffered operands + scratch) with headroom.
    vmem_limit = int(min(max(2 * operand_bytes + scratch_bytes + (4 << 20),
                             16 << 20), 96 << 20))

    out_pad = pl.pallas_call(
        _fused_lstm_fc_kernel,
        out_shape=jax.ShapeDtypeStruct((B_pad, O), jnp.float32),
        scratch_shapes=[
            pltpu.VMEM((T * B_pad, 4 * H), jnp.float32),   # pre-activations
            pltpu.VMEM((T * B_pad, H), jnp.float32),       # hidden sequence
        ],
        compiler_params=pltpu.CompilerParams(vmem_limit_bytes=vmem_limit),
        cost_estimate=pl.CostEstimate(
            flops=flops,
            transcendentals=transcendentals,
            bytes_accessed=operand_bytes,
        ),
    )(x_2d, wih0_t, wihr_t, whh_t, b_stk, wfc_t, bfc)
    return out_pad[:B]


# ----------------------------------------------------------------------------
# Parameter init (PyTorch nn.LSTM / nn.Linear layout) + packing for the kernel
# ----------------------------------------------------------------------------
def init_params(key, input_size, hidden_size, output_size, num_layers):
    """Raw params mirroring nn.LSTM / nn.Linear (uniform +-1/sqrt(H), gate order i,f,g,o)."""
    k = 1.0 / np.sqrt(hidden_size)
    raw = {"layers": []}
    for layer in range(num_layers):
        d_in = input_size if layer == 0 else hidden_size
        key, k1, k2, k3, k4 = jax.random.split(key, 5)
        raw["layers"].append(
            {
                "w_ih": jax.random.uniform(k1, (4 * hidden_size, d_in), jnp.float32, -k, k),
                "w_hh": jax.random.uniform(k2, (4 * hidden_size, hidden_size), jnp.float32, -k, k),
                "b_ih": jax.random.uniform(k3, (4 * hidden_size,), jnp.float32, -k, k),
                "b_hh": jax.random.uniform(k4, (4 * hidden_size,), jnp.float32, -k, k),
            }
        )
    key, k5, k6 = jax.random.split(key, 3)
    raw["w_fc"] = jax.random.uniform(k5, (output_size, hidden_size), jnp.float32, -k, k)
    raw["b_fc"] = jax.random.uniform(k6, (output_size,), jnp.float32, -k, k)
    return raw


def pack_params(raw, hidden_size):
    """Pack raw PyTorch-layout params into the fused-kernel layout.

    - reorder gate blocks (i,f,g,o) -> (i,f,o,g)
    - transpose each weight; keep W_ih and W_hh as SEPARATE operands
      (layer-0 W_ih^T stays at its natural (D, 4H) shape, no feature padding)
    - stack per-layer W_hh^T / biases; stack layers>=1 W_ih^T separately
    """
    H = hidden_size
    perm = np.concatenate(
        [np.arange(0, 2 * H), np.arange(3 * H, 4 * H), np.arange(2 * H, 3 * H)]
    )
    layers = raw["layers"]
    wih0_t = jnp.transpose(layers[0]["w_ih"][perm])               # (D, 4H)
    wihr, whh, bs = [], [], []
    for lp in layers:
        whh.append(jnp.transpose(lp["w_hh"][perm]))               # (H, 4H)
        bs.append(((lp["b_ih"] + lp["b_hh"])[perm]).reshape(1, 4 * H))
    for lp in layers[1:]:
        wihr.append(jnp.transpose(lp["w_ih"][perm]))              # (H, 4H)
    if not wihr:  # keep the kernel argument non-empty when num_layers == 1
        wihr.append(jnp.zeros((H, 4 * H), jnp.float32))
    return {
        "w_ih0_t": wih0_t,                                        # (D, 4H)
        "w_ihr_t": jnp.stack(wihr),                               # (max(L-1,1), H, 4H)
        "w_hh_t": jnp.stack(whh),                                 # (L, H, 4H)
        "b_stk": jnp.stack(bs),                                   # (L, 1, 4H)
        "w_fc_t": jnp.transpose(raw["w_fc"]),                     # (H, O)
        "b_fc": raw["b_fc"].reshape(1, -1),                       # (1, O)
    }


# ----------------------------------------------------------------------------
# Pure-JAX reference (PyTorch LSTM semantics, for correctness check)
# ----------------------------------------------------------------------------
def lstm_model_reference(raw, x_btd):
    h_seq = jnp.transpose(x_btd, (1, 0, 2))  # (T, B, D)
    for lp in raw["layers"]:
        H = lp["w_hh"].shape[1]
        B = h_seq.shape[1]
        w_ih_t, w_hh_t = lp["w_ih"].T, lp["w_hh"].T
        b = lp["b_ih"] + lp["b_hh"]

        def step(carry, x_t, w_ih_t=w_ih_t, w_hh_t=w_hh_t, b=b, H=H):
            h, c = carry
            gates = x_t @ w_ih_t + h @ w_hh_t + b
            i = jax.nn.sigmoid(gates[:, 0 * H:1 * H])
            f = jax.nn.sigmoid(gates[:, 1 * H:2 * H])
            g = jnp.tanh(gates[:, 2 * H:3 * H])
            o = jax.nn.sigmoid(gates[:, 3 * H:4 * H])
            c = f * c + i * g
            h = o * jnp.tanh(c)
            return (h, c), h

        init = (jnp.zeros((B, H), jnp.float32), jnp.zeros((B, H), jnp.float32))
        (_, _), h_seq = lax.scan(step, init, h_seq)
    return h_seq[-1] @ raw["w_fc"].T + raw["b_fc"][None, :]


if __name__ == "__main__":
    B, T = 2, 8
    input_size, hidden_size, output_size, num_layers = 16, 32, 4, 2

    key = jax.random.PRNGKey(0)
    key, pkey, xkey = jax.random.split(key, 3)
    raw = init_params(pkey, input_size, hidden_size, output_size, num_layers)
    params = pack_params(raw, hidden_size)
    x = jax.random.normal(xkey, (B, T, input_size), jnp.float32)

    fwd = jax.jit(lstm_model_forward)
    out = jax.block_until_ready(fwd(params, x))

    ref = jax.block_until_ready(lstm_model_reference(raw, x))
    assert out.shape == (B, output_size)
    np.testing.assert_allclose(np.asarray(out), np.asarray(ref), rtol=1e-5, atol=1e-5)

    print("KERNEL_OK")
</pallas_src>

<mosaic_0001>
module attributes {stable_mosaic.version = 11 : i64} {
  func.func @_fused_lstm_fc_kernel(%arg0: memref<64x16xf32, #tpu.memory_space<vmem>>, %arg1: memref<16x128xf32, #tpu.memory_space<vmem>>, %arg2: memref<1x32x128xf32, #tpu.memory_space<vmem>>, %arg3: memref<2x32x128xf32, #tpu.memory_space<vmem>>, %arg4: memref<2x1x128xf32, #tpu.memory_space<vmem>>, %arg5: memref<32x4xf32, #tpu.memory_space<vmem>>, %arg6: memref<1x4xf32, #tpu.memory_space<vmem>>, %arg7: memref<8x4xf32, #tpu.memory_space<vmem>>, %arg8: memref<64x128xf32, #tpu.memory_space<vmem>>, %arg9: memref<64x32xf32, #tpu.memory_space<vmem>>) attributes {dimension_semantics = [], scalar_prefetch = 0 : i64, scratch_operands = 2 : i64, tpu.core_type = #tpu.core_type<tc>} {
    %c0 = arith.constant 0 : index
    %c0_0 = arith.constant 0 : index
    %c0_1 = arith.constant 0 : index
    %0 = vector.load %arg3[%c0, %c0_0, %c0_1] : memref<2x32x128xf32, #tpu.memory_space<vmem>>, vector<1x32x128xf32>
    %1 = vector.shape_cast %0 : vector<1x32x128xf32> to vector<32x128xf32>
    %c0_2 = arith.constant 0 : index
    %c0_3 = arith.constant 0 : index
    %c0_4 = arith.constant 0 : index
    %2 = vector.load %arg4[%c0_2, %c0_3, %c0_4] : memref<2x1x128xf32, #tpu.memory_space<vmem>>, vector<1x1x128xf32>
    %3 = vector.shape_cast %2 : vector<1x1x128xf32> to vector<1x128xf32>
    %c0_5 = arith.constant 0 : index
    %c0_6 = arith.constant 0 : index
    %4 = vector.load %arg0[%c0_5, %c0_6] : memref<64x16xf32, #tpu.memory_space<vmem>>, vector<64x16xf32>
    %c0_7 = arith.constant 0 : index
    %c0_8 = arith.constant 0 : index
    %5 = vector.load %arg1[%c0_7, %c0_8] : memref<16x128xf32, #tpu.memory_space<vmem>>, vector<16x128xf32>
    %cst = arith.constant dense<0.000000e+00> : vector<64x128xf32>
    %6 = tpu.matmul %4, %5, %cst {dimension_numbers = #tpu.dot_dimension_numbers<[1], [0], [0], [1], [0, 0, 1, 1], [], []>} : vector<64x16xf32>, vector<16x128xf32>, vector<64x128xf32> -> vector<64x128xf32>
    %7 = vector.broadcast %3 : vector<1x128xf32> to vector<64x128xf32>
    %8 = arith.addf %6, %7 : vector<64x128xf32>
    %c0_9 = arith.constant 0 : index
    %c0_10 = arith.constant 0 : index
    %9 = vector.load %arg8[%c0_9, %c0_10] : memref<64x128xf32, #tpu.memory_space<vmem>>, vector<64x128xf32>
    tpu.vector_store %arg8[%c0_9, %c0_10], %8 {strides = array<i32>} : memref<64x128xf32, #tpu.memory_space<vmem>>, vector<64x128xf32>,
    %cst_11 = arith.constant 0.000000e+00 : f32
    %10 = vector.broadcast %cst_11 : f32 to vector<8x32xf32>
    %cst_12 = arith.constant 0.000000e+00 : f32
    %11 = vector.broadcast %cst_12 : f32 to vector<8x32xf32>
    %c0_i32 = arith.constant 0 : i32
    %c8_i32 = arith.constant 8 : i32
    %12 = arith.muli %c0_i32, %c8_i32 : i32
    %13 = tpu.assume_multiple %12, 8 : i32
    %14 = arith.index_cast %13 : i32 to index
    %c0_13 = arith.constant 0 : index
    %15 = vector.load %arg8[%14, %c0_13] : memref<64x128xf32, #tpu.memory_space<vmem>>, vector<8x128xf32>
    %cst_14 = arith.constant dense<0.000000e+00> : vector<8x128xf32>
    %16 = tpu.matmul %10, %1, %cst_14 {dimension_numbers = #tpu.dot_dimension_numbers<[1], [0], [0], [1], [0, 0, 1, 1], [], []>} : vector<8x32xf32>, vector<32x128xf32>, vector<8x128xf32> -> vector<8x128xf32>
    %17 = arith.addf %15, %16 : vector<8x128xf32>
    %18 = vector.extract_strided_slice %17 {offsets = [0, 0], sizes = [8, 96], strides = [1, 1]} : vector<8x128xf32> to vector<8x96xf32>
    %19 = arith.negf %18 : vector<8x96xf32>
    %20 = math.exp %19 : vector<8x96xf32>
    %cst_15 = arith.constant 1.000000e+00 : f32
    %21 = vector.broadcast %cst_15 : f32 to vector<8x96xf32>
    %22 = arith.addf %21, %20 : vector<8x96xf32>
    %23 = arith.divf %21, %22 : vector<8x96xf32>
    %24 = vector.extract_strided_slice %17 {offsets = [0, 96], sizes = [8, 32], strides = [1, 1]} : vector<8x128xf32> to vector<8x32xf32>
    %25 = math.tanh %24 : vector<8x32xf32>
    %26 = vector.extract_strided_slice %23 {offsets = [0, 0], sizes = [8, 32], strides = [1, 1]} : vector<8x96xf32> to vector<8x32xf32>
    %27 = vector.extract_strided_slice %23 {offsets = [0, 32], sizes = [8, 32], strides = [1, 1]} : vector<8x96xf32> to vector<8x32xf32>
    %28 = vector.extract_strided_slice %23 {offsets = [0, 64], sizes = [8, 32], strides = [1, 1]} : vector<8x96xf32> to vector<8x32xf32>
    %29 = arith.mulf %27, %11 : vector<8x32xf32>
    %30 = arith.mulf %26, %25 : vector<8x32xf32>
    %31 = arith.addf %29, %30 : vector<8x32xf32>
    %32 = math.tanh %31 : vector<8x32xf32>
    %33 = arith.mulf %28, %32 : vector<8x32xf32>
    %34 = arith.index_cast %13 : i32 to index
    %c0_16 = arith.constant 0 : index
    %35 = vector.load %arg9[%34, %c0_16] : memref<64x32xf32, #tpu.memory_space<vmem>>, vector<8x32xf32>
    tpu.vector_store %arg9[%34, %c0_16], %33 {strides = array<i32>} : memref<64x32xf32, #tpu.memory_space<vmem>>, vector<8x32xf32>,
    %c1_i32 = arith.constant 1 : i32
    %c8_i32_17 = arith.constant 8 : i32
    %36 = arith.muli %c1_i32, %c8_i32_17 : i32
    %37 = tpu.assume_multiple %36, 8 : i32
    %38 = arith.index_cast %37 : i32 to index
    %c0_18 = arith.constant 0 : index
    %39 = vector.load %arg8[%38, %c0_18] : memref<64x128xf32, #tpu.memory_space<vmem>>, vector<8x128xf32>
    %cst_19 = arith.constant dense<0.000000e+00> : vector<8x128xf32>
    %40 = tpu.matmul %33, %1, %cst_19 {dimension_numbers = #tpu.dot_dimension_numbers<[1], [0], [0], [1], [0, 0, 1, 1], [], []>} : vector<8x32xf32>, vector<32x128xf32>, vector<8x128xf32> -> vector<8x128xf32>
    %41 = arith.addf %39, %40 : vector<8x128xf32>
    %42 = vector.extract_strided_slice %41 {offsets = [0, 0], sizes = [8, 96], strides = [1, 1]} : vector<8x128xf32> to vector<8x96xf32>
    %43 = arith.negf %42 : vector<8x96xf32>
    %44 = math.exp %43 : vector<8x96xf32>
    %cst_20 = arith.constant 1.000000e+00 : f32
    %45 = vector.broadcast %cst_20 : f32 to vector<8x96xf32>
    %46 = arith.addf %45, %44 : vector<8x96xf32>
    %47 = arith.divf %45, %46 : vector<8x96xf32>
    %48 = vector.extract_strided_slice %41 {offsets = [0, 96], sizes = [8, 32], strides = [1, 1]} : vector<8x128xf32> to vector<8x32xf32>
    %49 = math.tanh %48 : vector<8x32xf32>
    %50 = vector.extract_strided_slice %47 {offsets = [0, 0], sizes = [8, 32], strides = [1, 1]} : vector<8x96xf32> to vector<8x32xf32>
    %51 = vector.extract_strided_slice %47 {offsets = [0, 32], sizes = [8, 32], strides = [1, 1]} : vector<8x96xf32> to vector<8x32xf32>
    %52 = vector.extract_strided_slice %47 {offsets = [0, 64], sizes = [8, 32], strides = [1, 1]} : vector<8x96xf32> to vector<8x32xf32>
    %53 = arith.mulf %51, %31 : vector<8x32xf32>
    %54 = arith.mulf %50, %49 : vector<8x32xf32>
    %55 = arith.addf %53, %54 : vector<8x32xf32>
    %56 = math.tanh %55 : vector<8x32xf32>
    %57 = arith.mulf %52, %56 : vector<8x32xf32>
    %58 = arith.index_cast %37 : i32 to index
    %c0_21 = arith.constant 0 : index
    %59 = vector.load %arg9[%58, %c0_21] : memref<64x32xf32, #tpu.memory_space<vmem>>, vector<8x32xf32>
    tpu.vector_store %arg9[%58, %c0_21], %57 {strides = array<i32>} : memref<64x32xf32, #tpu.memory_space<vmem>>, vector<8x32xf32>,
    %c2_i32 = arith.constant 2 : i32
    %c8_i32_22 = arith.constant 8 : i32
    %60 = arith.muli %c2_i32, %c8_i32_22 : i32
    %61 = tpu.assume_multiple %60, 8 : i32
    %62 = arith.index_cast %61 : i32 to index
    %c0_23 = arith.constant 0 : index
    %63 = vector.load %arg8[%62, %c0_23] : memref<64x128xf32, #tpu.memory_space<vmem>>, vector<8x128xf32>
    %cst_24 = arith.constant dense<0.000000e+00> : vector<8x128xf32>
    %64 = tpu.matmul %57, %1, %cst_24 {dimension_numbers = #tpu.dot_dimension_numbers<[1], [0], [0], [1], [0, 0, 1, 1], [], []>} : vector<8x32xf32>, vector<32x128xf32>, vector<8x128xf32> -> vector<8x128xf32>
    %65 = arith.addf %63, %64 : vector<8x128xf32>
    %66 = vector.extract_strided_slice %65 {offsets = [0, 0], sizes = [8, 96], strides = [1, 1]} : vector<8x128xf32> to vector<8x96xf32>
    %67 = arith.negf %66 : vector<8x96xf32>
    %68 = math.exp %67 : vector<8x96xf32>
    %cst_25 = arith.constant 1.000000e+00 : f32
    %69 = vector.broadcast %cst_25 : f32 to vector<8x96xf32>
    %70 = arith.addf %69, %68 : vector<8x96xf32>
    %71 = arith.divf %69, %70 : vector<8x96xf32>
    %72 = vector.extract_strided_slice %65 {offsets = [0, 96], sizes = [8, 32], strides = [1, 1]} : vector<8x128xf32> to vector<8x32xf32>
    %73 = math.tanh %72 : vector<8x32xf32>
    %74 = vector.extract_strided_slice %71 {offsets = [0, 0], sizes = [8, 32], strides = [1, 1]} : vector<8x96xf32> to vector<8x32xf32>
    %75 = vector.extract_strided_slice %71 {offsets = [0, 32], sizes = [8, 32], strides = [1, 1]} : vector<8x96xf32> to vector<8x32xf32>
    %76 = vector.extract_strided_slice %71 {offsets = [0, 64], sizes = [8, 32], strides = [1, 1]} : vector<8x96xf32> to vector<8x32xf32>
    %77 = arith.mulf %75, %55 : vector<8x32xf32>
    %78 = arith.mulf %74, %73 : vector<8x32xf32>
    %79 = arith.addf %77, %78 : vector<8x32xf32>
    %80 = math.tanh %79 : vector<8x32xf32>
    %81 = arith.mulf %76, %80 : vector<8x32xf32>
    %82 = arith.index_cast %61 : i32 to index
    %c0_26 = arith.constant 0 : index
    %83 = vector.load %arg9[%82, %c0_26] : memref<64x32xf32, #tpu.memory_space<vmem>>, vector<8x32xf32>
    tpu.vector_store %arg9[%82, %c0_26], %81 {strides = array<i32>} : memref<64x32xf32, #tpu.memory_space<vmem>>, vector<8x32xf32>,
    %c3_i32 = arith.constant 3 : i32
    %c8_i32_27 = arith.constant 8 : i32
    %84 = arith.muli %c3_i32, %c8_i32_27 : i32
    %85 = tpu.assume_multiple %84, 8 : i32
    %86 = arith.index_cast %85 : i32 to index
    %c0_28 = arith.constant 0 : index
    %87 = vector.load %arg8[%86, %c0_28] : memref<64x128xf32, #tpu.memory_space<vmem>>, vector<8x128xf32>
    %cst_29 = arith.constant dense<0.000000e+00> : vector<8x128xf32>
    %88 = tpu.matmul %81, %1, %cst_29 {dimension_numbers = #tpu.dot_dimension_numbers<[1], [0], [0], [1], [0, 0, 1, 1], [], []>} : vector<8x32xf32>, vector<32x128xf32>, vector<8x128xf32> -> vector<8x128xf32>
    %89 = arith.addf %87, %88 : vector<8x128xf32>
    %90 = vector.extract_strided_slice %89 {offsets = [0, 0], sizes = [8, 96], strides = [1, 1]} : vector<8x128xf32> to vector<8x96xf32>
    %91 = arith.negf %90 : vector<8x96xf32>
    %92 = math.exp %91 : vector<8x96xf32>
    %cst_30 = arith.constant 1.000000e+00 : f32
    %93 = vector.broadcast %cst_30 : f32 to vector<8x96xf32>
    %94 = arith.addf %93, %92 : vector<8x96xf32>
    %95 = arith.divf %93, %94 : vector<8x96xf32>
    %96 = vector.extract_strided_slice %89 {offsets = [0, 96], sizes = [8, 32], strides = [1, 1]} : vector<8x128xf32> to vector<8x32xf32>
    %97 = math.tanh %96 : vector<8x32xf32>
    %98 = vector.extract_strided_slice %95 {offsets = [0, 0], sizes = [8, 32], strides = [1, 1]} : vector<8x96xf32> to vector<8x32xf32>
    %99 = vector.extract_strided_slice %95 {offsets = [0, 32], sizes = [8, 32], strides = [1, 1]} : vector<8x96xf32> to vector<8x32xf32>
    %100 = vector.extract_strided_slice %95 {offsets = [0, 64], sizes = [8, 32], strides = [1, 1]} : vector<8x96xf32> to vector<8x32xf32>
    %101 = arith.mulf %99, %79 : vector<8x32xf32>
    %102 = arith.mulf %98, %97 : vector<8x32xf32>
    %103 = arith.addf %101, %102 : vector<8x32xf32>
    %104 = math.tanh %103 : vector<8x32xf32>
    %105 = arith.mulf %100, %104 : vector<8x32xf32>
    %106 = arith.index_cast %85 : i32 to index
    %c0_31 = arith.constant 0 : index
    %107 = vector.load %arg9[%106, %c0_31] : memref<64x32xf32, #tpu.memory_space<vmem>>, vector<8x32xf32>
    tpu.vector_store %arg9[%106, %c0_31], %105 {strides = array<i32>} : memref<64x32xf32, #tpu.memory_space<vmem>>, vector<8x32xf32>,
    %c4_i32 = arith.constant 4 : i32
    %c8_i32_32 = arith.constant 8 : i32
    %108 = arith.muli %c4_i32, %c8_i32_32 : i32
    %109 = tpu.assume_multiple %108, 8 : i32
    %110 = arith.index_cast %109 : i32 to index
    %c0_33 = arith.constant 0 : index
    %111 = vector.load %arg8[%110, %c0_33] : memref<64x128xf32, #tpu.memory_space<vmem>>, vector<8x128xf32>
    %cst_34 = arith.constant dense<0.000000e+00> : vector<8x128xf32>
    %112 = tpu.matmul %105, %1, %cst_34 {dimension_numbers = #tpu.dot_dimension_numbers<[1], [0], [0], [1], [0, 0, 1, 1], [], []>} : vector<8x32xf32>, vector<32x128xf32>, vector<8x128xf32> -> vector<8x128xf32>
    %113 = arith.addf %111, %112 : vector<8x128xf32>
    %114 = vector.extract_strided_slice %113 {offsets = [0, 0], sizes = [8, 96], strides = [1, 1]} : vector<8x128xf32> to vector<8x96xf32>
    %115 = arith.negf %114 : vector<8x96xf32>
    %116 = math.exp %115 : vector<8x96xf32>
    %cst_35 = arith.constant 1.000000e+00 : f32
    %117 = vector.broadcast %cst_35 : f32 to vector<8x96xf32>
    %118 = arith.addf %117, %116 : vector<8x96xf32>
    %119 = arith.divf %117, %118 : vector<8x96xf32>
    %120 = vector.extract_strided_slice %113 {offsets = [0, 96], sizes = [8, 32], strides = [1, 1]} : vector<8x128xf32> to vector<8x32xf32>
    %121 = math.tanh %120 : vector<8x32xf32>
    %122 = vector.extract_strided_slice %119 {offsets = [0, 0], sizes = [8, 32], strides = [1, 1]} : vector<8x96xf32> to vector<8x32xf32>
    %123 = vector.extract_strided_slice %119 {offsets = [0, 32], sizes = [8, 32], strides = [1, 1]} : vector<8x96xf32> to vector<8x32xf32>
    %124 = vector.extract_strided_slice %119 {offsets = [0, 64], sizes = [8, 32], strides = [1, 1]} : vector<8x96xf32> to vector<8x32xf32>
    %125 = arith.mulf %123, %103 : vector<8x32xf32>
    %126 = arith.mulf %122, %121 : vector<8x32xf32>
    %127 = arith.addf %125, %126 : vector<8x32xf32>
    %128 = math.tanh %127 : vector<8x32xf32>
    %129 = arith.mulf %124, %128 : vector<8x32xf32>
    %130 = arith.index_cast %109 : i32 to index
    %c0_36 = arith.constant 0 : index
    %131 = vector.load %arg9[%130, %c0_36] : memref<64x32xf32, #tpu.memory_space<vmem>>, vector<8x32xf32>
    tpu.vector_store %arg9[%130, %c0_36], %129 {strides = array<i32>} : memref<64x32xf32, #tpu.memory_space<vmem>>, vector<8x32xf32>,
    %c5_i32 = arith.constant 5 : i32
    %c8_i32_37 = arith.constant 8 : i32
    %132 = arith.muli %c5_i32, %c8_i32_37 : i32
    %133 = tpu.assume_multiple %132, 8 : i32
    %134 = arith.index_cast %133 : i32 to index
    %c0_38 = arith.constant 0 : index
    %135 = vector.load %arg8[%134, %c0_38] : memref<64x128xf32, #tpu.memory_space<vmem>>, vector<8x128xf32>
    %cst_39 = arith.constant dense<0.000000e+00> : vector<8x128xf32>
    %136 = tpu.matmul %129, %1, %cst_39 {dimension_numbers = #tpu.dot_dimension_numbers<[1], [0], [0], [1], [0, 0, 1, 1], [], []>} : vector<8x32xf32>, vector<32x128xf32>, vector<8x128xf32> -> vector<8x128xf32>
    %137 = arith.addf %135, %136 : vector<8x128xf32>
    %138 = vector.extract_strided_slice %137 {offsets = [0, 0], sizes = [8, 96], strides = [1, 1]} : vector<8x128xf32> to vector<8x96xf32>
    %139 = arith.negf %138 : vector<8x96xf32>
    %140 = math.exp %139 : vector<8x96xf32>
    %cst_40 = arith.constant 1.000000e+00 : f32
    %141 = vector.broadcast %cst_40 : f32 to vector<8x96xf32>
    %142 = arith.addf %141, %140 : vector<8x96xf32>
    %143 = arith.divf %141, %142 : vector<8x96xf32>
    %144 = vector.extract_strided_slice %137 {offsets = [0, 96], sizes = [8, 32], strides = [1, 1]} : vector<8x128xf32> to vector<8x32xf32>
    %145 = math.tanh %144 : vector<8x32xf32>
    %146 = vector.extract_strided_slice %143 {offsets = [0, 0], sizes = [8, 32], strides = [1, 1]} : vector<8x96xf32> to vector<8x32xf32>
    %147 = vector.extract_strided_slice %143 {offsets = [0, 32], sizes = [8, 32], strides = [1, 1]} : vector<8x96xf32> to vector<8x32xf32>
    %148 = vector.extract_strided_slice %143 {offsets = [0, 64], sizes = [8, 32], strides = [1, 1]} : vector<8x96xf32> to vector<8x32xf32>
    %149 = arith.mulf %147, %127 : vector<8x32xf32>
    %150 = arith.mulf %146, %145 : vector<8x32xf32>
    %151 = arith.addf %149, %150 : vector<8x32xf32>
    %152 = math.tanh %151 : vector<8x32xf32>
    %153 = arith.mulf %148, %152 : vector<8x32xf32>
    %154 = arith.index_cast %133 : i32 to index
    %c0_41 = arith.constant 0 : index
    %155 = vector.load %arg9[%154, %c0_41] : memref<64x32xf32, #tpu.memory_space<vmem>>, vector<8x32xf32>
    tpu.vector_store %arg9[%154, %c0_41], %153 {strides = array<i32>} : memref<64x32xf32, #tpu.memory_space<vmem>>, vector<8x32xf32>,
    %c6_i32 = arith.constant 6 : i32
    %c8_i32_42 = arith.constant 8 : i32
    %156 = arith.muli %c6_i32, %c8_i32_42 : i32
    %157 = tpu.assume_multiple %156, 8 : i32
    %158 = arith.index_cast %157 : i32 to index
    %c0_43 = arith.constant 0 : index
    %159 = vector.load %arg8[%158, %c0_43] : memref<64x128xf32, #tpu.memory_space<vmem>>, vector<8x128xf32>
    %cst_44 = arith.constant dense<0.000000e+00> : vector<8x128xf32>
    %160 = tpu.matmul %153, %1, %cst_44 {dimension_numbers = #tpu.dot_dimension_numbers<[1], [0], [0], [1], [0, 0, 1, 1], [], []>} : vector<8x32xf32>, vector<32x128xf32>, vector<8x128xf32> -> vector<8x128xf32>
    %161 = arith.addf %159, %160 : vector<8x128xf32>
    %162 = vector.extract_strided_slice %161 {offsets = [0, 0], sizes = [8, 96], strides = [1, 1]} : vector<8x128xf32> to vector<8x96xf32>
    %163 = arith.negf %162 : vector<8x96xf32>
    %164 = math.exp %163 : vector<8x96xf32>
    %cst_45 = arith.constant 1.000000e+00 : f32
    %165 = vector.broadcast %cst_45 : f32 to vector<8x96xf32>
    %166 = arith.addf %165, %164 : vector<8x96xf32>
    %167 = arith.divf %165, %166 : vector<8x96xf32>
    %168 = vector.extract_strided_slice %161 {offsets = [0, 96], sizes = [8, 32], strides = [1, 1]} : vector<8x128xf32> to vector<8x32xf32>
    %169 = math.tanh %168 : vector<8x32xf32>
    %170 = vector.extract_strided_slice %167 {offsets = [0, 0], sizes = [8, 32], strides = [1, 1]} : vector<8x96xf32> to vector<8x32xf32>
    %171 = vector.extract_strided_slice %167 {offsets = [0, 32], sizes = [8, 32], strides = [1, 1]} : vector<8x96xf32> to vector<8x32xf32>
    %172 = vector.extract_strided_slice %167 {offsets = [0, 64], sizes = [8, 32], strides = [1, 1]} : vector<8x96xf32> to vector<8x32xf32>
    %173 = arith.mulf %171, %151 : vector<8x32xf32>
    %174 = arith.mulf %170, %169 : vector<8x32xf32>
    %175 = arith.addf %173, %174 : vector<8x32xf32>
    %176 = math.tanh %175 : vector<8x32xf32>
    %177 = arith.mulf %172, %176 : vector<8x32xf32>
    %178 = arith.index_cast %157 : i32 to index
    %c0_46 = arith.constant 0 : index
    %179 = vector.load %arg9[%178, %c0_46] : memref<64x32xf32, #tpu.memory_space<vmem>>, vector<8x32xf32>
    tpu.vector_store %arg9[%178, %c0_46], %177 {strides = array<i32>} : memref<64x32xf32, #tpu.memory_space<vmem>>, vector<8x32xf32>,
    %c7_i32 = arith.constant 7 : i32
    %c8_i32_47 = arith.constant 8 : i32
    %180 = arith.muli %c7_i32, %c8_i32_47 : i32
    %181 = tpu.assume_multiple %180, 8 : i32
    %182 = arith.index_cast %181 : i32 to index
    %c0_48 = arith.constant 0 : index
    %183 = vector.load %arg8[%182, %c0_48] : memref<64x128xf32, #tpu.memory_space<vmem>>, vector<8x128xf32>
    %cst_49 = arith.constant dense<0.000000e+00> : vector<8x128xf32>
    %184 = tpu.matmul %177, %1, %cst_49 {dimension_numbers = #tpu.dot_dimension_numbers<[1], [0], [0], [1], [0, 0, 1, 1], [], []>} : vector<8x32xf32>, vector<32x128xf32>, vector<8x128xf32> -> vector<8x128xf32>
    %185 = arith.addf %183, %184 : vector<8x128xf32>
    %186 = vector.extract_strided_slice %185 {offsets = [0, 0], sizes = [8, 96], strides = [1, 1]} : vector<8x128xf32> to vector<8x96xf32>
    %187 = arith.negf %186 : vector<8x96xf32>
    %188 = math.exp %187 : vector<8x96xf32>
    %cst_50 = arith.constant 1.000000e+00 : f32
    %189 = vector.broadcast %cst_50 : f32 to vector<8x96xf32>
    %190 = arith.addf %189, %188 : vector<8x96xf32>
    %191 = arith.divf %189, %190 : vector<8x96xf32>
    %192 = vector.extract_strided_slice %185 {offsets = [0, 96], sizes = [8, 32], strides = [1, 1]} : vector<8x128xf32> to vector<8x32xf32>
    %193 = math.tanh %192 : vector<8x32xf32>
    %194 = vector.extract_strided_slice %191 {offsets = [0, 0], sizes = [8, 32], strides = [1, 1]} : vector<8x96xf32> to vector<8x32xf32>
    %195 = vector.extract_strided_slice %191 {offsets = [0, 32], sizes = [8, 32], strides = [1, 1]} : vector<8x96xf32> to vector<8x32xf32>
    %196 = vector.extract_strided_slice %191 {offsets = [0, 64], sizes = [8, 32], strides = [1, 1]} : vector<8x96xf32> to vector<8x32xf32>
    %197 = arith.mulf %195, %175 : vector<8x32xf32>
    %198 = arith.mulf %194, %193 : vector<8x32xf32>
    %199 = arith.addf %197, %198 : vector<8x32xf32>
    %200 = math.tanh %199 : vector<8x32xf32>
    %201 = arith.mulf %196, %200 : vector<8x32xf32>
    %202 = arith.index_cast %181 : i32 to index
    %c0_51 = arith.constant 0 : index
    %203 = vector.load %arg9[%202, %c0_51] : memref<64x32xf32, #tpu.memory_space<vmem>>, vector<8x32xf32>
    tpu.vector_store %arg9[%202, %c0_51], %201 {strides = array<i32>} : memref<64x32xf32, #tpu.memory_space<vmem>>, vector<8x32xf32>,
    %c8_i32_52 = arith.constant 8 : i32
    %c1 = arith.constant 1 : index
    %c0_53 = arith.constant 0 : index
    %c0_54 = arith.constant 0 : index
    %204 = vector.load %arg3[%c1, %c0_53, %c0_54] : memref<2x32x128xf32, #tpu.memory_space<vmem>>, vector<1x32x128xf32>
    %205 = vector.shape_cast %204 : vector<1x32x128xf32> to vector<32x128xf32>
    %c1_55 = arith.constant 1 : index
    %c0_56 = arith.constant 0 : index
    %c0_57 = arith.constant 0 : index
    %206 = vector.load %arg4[%c1_55, %c0_56, %c0_57] : memref<2x1x128xf32, #tpu.memory_space<vmem>>, vector<1x1x128xf32>
    %207 = vector.shape_cast %206 : vector<1x1x128xf32> to vector<1x128xf32>
    %c0_58 = arith.constant 0 : index
    %c0_59 = arith.constant 0 : index
    %208 = vector.load %arg9[%c0_58, %c0_59] : memref<64x32xf32, #tpu.memory_space<vmem>>, vector<64x32xf32>
    %c0_60 = arith.constant 0 : index
    %c0_61 = arith.constant 0 : index
    %c0_62 = arith.constant 0 : index
    %209 = vector.load %arg2[%c0_60, %c0_61, %c0_62] : memref<1x32x128xf32, #tpu.memory_space<vmem>>, vector<1x32x128xf32>
    %210 = vector.shape_cast %209 : vector<1x32x128xf32> to vector<32x128xf32>
    %cst_63 = arith.constant dense<0.000000e+00> : vector<64x128xf32>
    %211 = tpu.matmul %208, %210, %cst_63 {dimension_numbers = #tpu.dot_dimension_numbers<[1], [0], [0], [1], [0, 0, 1, 1], [], []>} : vector<64x32xf32>, vector<32x128xf32>, vector<64x128xf32> -> vector<64x128xf32>
    %212 = vector.broadcast %207 : vector<1x128xf32> to vector<64x128xf32>
    %213 = arith.addf %211, %212 : vector<64x128xf32>
    %c0_64 = arith.constant 0 : index
    %c0_65 = arith.constant 0 : index
    %214 = vector.load %arg8[%c0_64, %c0_65] : memref<64x128xf32, #tpu.memory_space<vmem>>, vector<64x128xf32>
    tpu.vector_store %arg8[%c0_64, %c0_65], %213 {strides = array<i32>} : memref<64x128xf32, #tpu.memory_space<vmem>>, vector<64x128xf32>,
    %cst_66 = arith.constant 0.000000e+00 : f32
    %215 = vector.broadcast %cst_66 : f32 to vector<8x32xf32>
    %cst_67 = arith.constant 0.000000e+00 : f32
    %216 = vector.broadcast %cst_67 : f32 to vector<8x32xf32>
    %c0_i32_68 = arith.constant 0 : i32
    %c8_i32_69 = arith.constant 8 : i32
    %217 = arith.muli %c0_i32_68, %c8_i32_69 : i32
    %218 = tpu.assume_multiple %217, 8 : i32
    %219 = arith.index_cast %218 : i32 to index
    %c0_70 = arith.constant 0 : index
    %220 = vector.load %arg8[%219, %c0_70] : memref<64x128xf32, #tpu.memory_space<vmem>>, vector<8x128xf32>
    %cst_71 = arith.constant dense<0.000000e+00> : vector<8x128xf32>
    %221 = tpu.matmul %215, %205, %cst_71 {dimension_numbers = #tpu.dot_dimension_numbers<[1], [0], [0], [1], [0, 0, 1, 1], [], []>} : vector<8x32xf32>, vector<32x128xf32>, vector<8x128xf32> -> vector<8x128xf32>
    %222 = arith.addf %220, %221 : vector<8x128xf32>
    %223 = vector.extract_strided_slice %222 {offsets = [0, 0], sizes = [8, 96], strides = [1, 1]} : vector<8x128xf32> to vector<8x96xf32>
    %224 = arith.negf %223 : vector<8x96xf32>
    %225 = math.exp %224 : vector<8x96xf32>
    %cst_72 = arith.constant 1.000000e+00 : f32
    %226 = vector.broadcast %cst_72 : f32 to vector<8x96xf32>
    %227 = arith.addf %226, %225 : vector<8x96xf32>
    %228 = arith.divf %226, %227 : vector<8x96xf32>
    %229 = vector.extract_strided_slice %222 {offsets = [0, 96], sizes = [8, 32], strides = [1, 1]} : vector<8x128xf32> to vector<8x32xf32>
    %230 = math.tanh %229 : vector<8x32xf32>
    %231 = vector.extract_strided_slice %228 {offsets = [0, 0], sizes = [8, 32], strides = [1, 1]} : vector<8x96xf32> to vector<8x32xf32>
    %232 = vector.extract_strided_slice %228 {offsets = [0, 32], sizes = [8, 32], strides = [1, 1]} : vector<8x96xf32> to vector<8x32xf32>
    %233 = vector.extract_strided_slice %228 {offsets = [0, 64], sizes = [8, 32], strides = [1, 1]} : vector<8x96xf32> to vector<8x32xf32>
    %234 = arith.mulf %232, %216 : vector<8x32xf32>
    %235 = arith.mulf %231, %230 : vector<8x32xf32>
    %236 = arith.addf %234, %235 : vector<8x32xf32>
    %237 = math.tanh %236 : vector<8x32xf32>
    %238 = arith.mulf %233, %237 : vector<8x32xf32>
    %c1_i32_73 = arith.constant 1 : i32
    %c8_i32_74 = arith.constant 8 : i32
    %239 = arith.muli %c1_i32_73, %c8_i32_74 : i32
    %240 = tpu.assume_multiple %239, 8 : i32
    %241 = arith.index_cast %240 : i32 to index
    %c0_75 = arith.constant 0 : index
    %242 = vector.load %arg8[%241, %c0_75] : memref<64x128xf32, #tpu.memory_space<vmem>>, vector<8x128xf32>
    %cst_76 = arith.constant dense<0.000000e+00> : vector<8x128xf32>
    %243 = tpu.matmul %238, %205, %cst_76 {dimension_numbers = #tpu.dot_dimension_numbers<[1], [0], [0], [1], [0, 0, 1, 1], [], []>} : vector<8x32xf32>, vector<32x128xf32>, vector<8x128xf32> -> vector<8x128xf32>
    %244 = arith.addf %242, %243 : vector<8x128xf32>
    %245 = vector.extract_strided_slice %244 {offsets = [0, 0], sizes = [8, 96], strides = [1, 1]} : vector<8x128xf32> to vector<8x96xf32>
    %246 = arith.negf %245 : vector<8x96xf32>
    %247 = math.exp %246 : vector<8x96xf32>
    %cst_77 = arith.constant 1.000000e+00 : f32
    %248 = vector.broadcast %cst_77 : f32 to vector<8x96xf32>
    %249 = arith.addf %248, %247 : vector<8x96xf32>
    %250 = arith.divf %248, %249 : vector<8x96xf32>
    %251 = vector.extract_strided_slice %244 {offsets = [0, 96], sizes = [8, 32], strides = [1, 1]} : vector<8x128xf32> to vector<8x32xf32>
    %252 = math.tanh %251 : vector<8x32xf32>
    %253 = vector.extract_strided_slice %250 {offsets = [0, 0], sizes = [8, 32], strides = [1, 1]} : vector<8x96xf32> to vector<8x32xf32>
    %254 = vector.extract_strided_slice %250 {offsets = [0, 32], sizes = [8, 32], strides = [1, 1]} : vector<8x96xf32> to vector<8x32xf32>
    %255 = vector.extract_strided_slice %250 {offsets = [0, 64], sizes = [8, 32], strides = [1, 1]} : vector<8x96xf32> to vector<8x32xf32>
    %256 = arith.mulf %254, %236 : vector<8x32xf32>
    %257 = arith.mulf %253, %252 : vector<8x32xf32>
    %258 = arith.addf %256, %257 : vector<8x32xf32>
    %259 = math.tanh %258 : vector<8x32xf32>
    %260 = arith.mulf %255, %259 : vector<8x32xf32>
    %c2_i32_78 = arith.constant 2 : i32
    %c8_i32_79 = arith.constant 8 : i32
    %261 = arith.muli %c2_i32_78, %c8_i32_79 : i32
    %262 = tpu.assume_multiple %261, 8 : i32
    %263 = arith.index_cast %262 : i32 to index
    %c0_80 = arith.constant 0 : index
    %264 = vector.load %arg8[%263, %c0_80] : memref<64x128xf32, #tpu.memory_space<vmem>>, vector<8x128xf32>
    %cst_81 = arith.constant dense<0.000000e+00> : vector<8x128xf32>
    %265 = tpu.matmul %260, %205, %cst_81 {dimension_numbers = #tpu.dot_dimension_numbers<[1], [0], [0], [1], [0, 0, 1, 1], [], []>} : vector<8x32xf32>, vector<32x128xf32>, vector<8x128xf32> -> vector<8x128xf32>
    %266 = arith.addf %264, %265 : vector<8x128xf32>
    %267 = vector.extract_strided_slice %266 {offsets = [0, 0], sizes = [8, 96], strides = [1, 1]} : vector<8x128xf32> to vector<8x96xf32>
    %268 = arith.negf %267 : vector<8x96xf32>
    %269 = math.exp %268 : vector<8x96xf32>
    %cst_82 = arith.constant 1.000000e+00 : f32
    %270 = vector.broadcast %cst_82 : f32 to vector<8x96xf32>
    %271 = arith.addf %270, %269 : vector<8x96xf32>
    %272 = arith.divf %270, %271 : vector<8x96xf32>
    %273 = vector.extract_strided_slice %266 {offsets = [0, 96], sizes = [8, 32], strides = [1, 1]} : vector<8x128xf32> to vector<8x32xf32>
    %274 = math.tanh %273 : vector<8x32xf32>
    %275 = vector.extract_strided_slice %272 {offsets = [0, 0], sizes = [8, 32], strides = [1, 1]} : vector<8x96xf32> to vector<8x32xf32>
    %276 = vector.extract_strided_slice %272 {offsets = [0, 32], sizes = [8, 32], strides = [1, 1]} : vector<8x96xf32> to vector<8x32xf32>
    %277 = vector.extract_strided_slice %272 {offsets = [0, 64], sizes = [8, 32], strides = [1, 1]} : vector<8x96xf32> to vector<8x32xf32>
    %278 = arith.mulf %276, %258 : vector<8x32xf32>
    %279 = arith.mulf %275, %274 : vector<8x32xf32>
    %280 = arith.addf %278, %279 : vector<8x32xf32>
    %281 = math.tanh %280 : vector<8x32xf32>
    %282 = arith.mulf %277, %281 : vector<8x32xf32>
    %c3_i32_83 = arith.constant 3 : i32
    %c8_i32_84 = arith.constant 8 : i32
    %283 = arith.muli %c3_i32_83, %c8_i32_84 : i32
    %284 = tpu.assume_multiple %283, 8 : i32
    %285 = arith.index_cast %284 : i32 to index
    %c0_85 = arith.constant 0 : index
    %286 = vector.load %arg8[%285, %c0_85] : memref<64x128xf32, #tpu.memory_space<vmem>>, vector<8x128xf32>
    %cst_86 = arith.constant dense<0.000000e+00> : vector<8x128xf32>
    %287 = tpu.matmul %282, %205, %cst_86 {dimension_numbers = #tpu.dot_dimension_numbers<[1], [0], [0], [1], [0, 0, 1, 1], [], []>} : vector<8x32xf32>, vector<32x128xf32>, vector<8x128xf32> -> vector<8x128xf32>
    %288 = arith.addf %286, %287 : vector<8x128xf32>
    %289 = vector.extract_strided_slice %288 {offsets = [0, 0], sizes = [8, 96], strides = [1, 1]} : vector<8x128xf32> to vector<8x96xf32>
    %290 = arith.negf %289 : vector<8x96xf32>
    %291 = math.exp %290 : vector<8x96xf32>
    %cst_87 = arith.constant 1.000000e+00 : f32
    %292 = vector.broadcast %cst_87 : f32 to vector<8x96xf32>
    %293 = arith.addf %292, %291 : vector<8x96xf32>
    %294 = arith.divf %292, %293 : vector<8x96xf32>
    %295 = vector.extract_strided_slice %288 {offsets = [0, 96], sizes = [8, 32], strides = [1, 1]} : vector<8x128xf32> to vector<8x32xf32>
    %296 = math.tanh %295 : vector<8x32xf32>
    %297 = vector.extract_strided_slice %294 {offsets = [0, 0], sizes = [8, 32], strides = [1, 1]} : vector<8x96xf32> to vector<8x32xf32>
    %298 = vector.extract_strided_slice %294 {offsets = [0, 32], sizes = [8, 32], strides = [1, 1]} : vector<8x96xf32> to vector<8x32xf32>
    %299 = vector.extract_strided_slice %294 {offsets = [0, 64], sizes = [8, 32], strides = [1, 1]} : vector<8x96xf32> to vector<8x32xf32>
    %300 = arith.mulf %298, %280 : vector<8x32xf32>
    %301 = arith.mulf %297, %296 : vector<8x32xf32>
    %302 = arith.addf %300, %301 : vector<8x32xf32>
    %303 = math.tanh %302 : vector<8x32xf32>
    %304 = arith.mulf %299, %303 : vector<8x32xf32>
    %c4_i32_88 = arith.constant 4 : i32
    %c8_i32_89 = arith.constant 8 : i32
    %305 = arith.muli %c4_i32_88, %c8_i32_89 : i32
    %306 = tpu.assume_multiple %305, 8 : i32
    %307 = arith.index_cast %306 : i32 to index
    %c0_90 = arith.constant 0 : index
    %308 = vector.load %arg8[%307, %c0_90] : memref<64x128xf32, #tpu.memory_space<vmem>>, vector<8x128xf32>
    %cst_91 = arith.constant dense<0.000000e+00> : vector<8x128xf32>
    %309 = tpu.matmul %304, %205, %cst_91 {dimension_numbers = #tpu.dot_dimension_numbers<[1], [0], [0], [1], [0, 0, 1, 1], [], []>} : vector<8x32xf32>, vector<32x128xf32>, vector<8x128xf32> -> vector<8x128xf32>
    %310 = arith.addf %308, %309 : vector<8x128xf32>
    %311 = vector.extract_strided_slice %310 {offsets = [0, 0], sizes = [8, 96], strides = [1, 1]} : vector<8x128xf32> to vector<8x96xf32>
    %312 = arith.negf %311 : vector<8x96xf32>
    %313 = math.exp %312 : vector<8x96xf32>
    %cst_92 = arith.constant 1.000000e+00 : f32
    %314 = vector.broadcast %cst_92 : f32 to vector<8x96xf32>
    %315 = arith.addf %314, %313 : vector<8x96xf32>
    %316 = arith.divf %314, %315 : vector<8x96xf32>
    %317 = vector.extract_strided_slice %310 {offsets = [0, 96], sizes = [8, 32], strides = [1, 1]} : vector<8x128xf32> to vector<8x32xf32>
    %318 = math.tanh %317 : vector<8x32xf32>
    %319 = vector.extract_strided_slice %316 {offsets = [0, 0], sizes = [8, 32], strides = [1, 1]} : vector<8x96xf32> to vector<8x32xf32>
    %320 = vector.extract_strided_slice %316 {offsets = [0, 32], sizes = [8, 32], strides = [1, 1]} : vector<8x96xf32> to vector<8x32xf32>
    %321 = vector.extract_strided_slice %316 {offsets = [0, 64], sizes = [8, 32], strides = [1, 1]} : vector<8x96xf32> to vector<8x32xf32>
    %322 = arith.mulf %320, %302 : vector<8x32xf32>
    %323 = arith.mulf %319, %318 : vector<8x32xf32>
    %324 = arith.addf %322, %323 : vector<8x32xf32>
    %325 = math.tanh %324 : vector<8x32xf32>
    %326 = arith.mulf %321, %325 : vector<8x32xf32>
    %c5_i32_93 = arith.constant 5 : i32
    %c8_i32_94 = arith.constant 8 : i32
    %327 = arith.muli %c5_i32_93, %c8_i32_94 : i32
    %328 = tpu.assume_multiple %327, 8 : i32
    %329 = arith.index_cast %328 : i32 to index
    %c0_95 = arith.constant 0 : index
    %330 = vector.load %arg8[%329, %c0_95] : memref<64x128xf32, #tpu.memory_space<vmem>>, vector<8x128xf32>
    %cst_96 = arith.constant dense<0.000000e+00> : vector<8x128xf32>
    %331 = tpu.matmul %326, %205, %cst_96 {dimension_numbers = #tpu.dot_dimension_numbers<[1], [0], [0], [1], [0, 0, 1, 1], [], []>} : vector<8x32xf32>, vector<32x128xf32>, vector<8x128xf32> -> vector<8x128xf32>
    %332 = arith.addf %330, %331 : vector<8x128xf32>
    %333 = vector.extract_strided_slice %332 {offsets = [0, 0], sizes = [8, 96], strides = [1, 1]} : vector<8x128xf32> to vector<8x96xf32>
    %334 = arith.negf %333 : vector<8x96xf32>
    %335 = math.exp %334 : vector<8x96xf32>
    %cst_97 = arith.constant 1.000000e+00 : f32
    %336 = vector.broadcast %cst_97 : f32 to vector<8x96xf32>
    %337 = arith.addf %336, %335 : vector<8x96xf32>
    %338 = arith.divf %336, %337 : vector<8x96xf32>
    %339 = vector.extract_strided_slice %332 {offsets = [0, 96], sizes = [8, 32], strides = [1, 1]} : vector<8x128xf32> to vector<8x32xf32>
    %340 = math.tanh %339 : vector<8x32xf32>
    %341 = vector.extract_strided_slice %338 {offsets = [0, 0], sizes = [8, 32], strides = [1, 1]} : vector<8x96xf32> to vector<8x32xf32>
    %342 = vector.extract_strided_slice %338 {offsets = [0, 32], sizes = [8, 32], strides = [1, 1]} : vector<8x96xf32> to vector<8x32xf32>
    %343 = vector.extract_strided_slice %338 {offsets = [0, 64], sizes = [8, 32], strides = [1, 1]} : vector<8x96xf32> to vector<8x32xf32>
    %344 = arith.mulf %342, %324 : vector<8x32xf32>
    %345 = arith.mulf %341, %340 : vector<8x32xf32>
    %346 = arith.addf %344, %345 : vector<8x32xf32>
    %347 = math.tanh %346 : vector<8x32xf32>
    %348 = arith.mulf %343, %347 : vector<8x32xf32>
    %c6_i32_98 = arith.constant 6 : i32
    %c8_i32_99 = arith.constant 8 : i32
    %349 = arith.muli %c6_i32_98, %c8_i32_99 : i32
    %350 = tpu.assume_multiple %349, 8 : i32
    %351 = arith.index_cast %350 : i32 to index
    %c0_100 = arith.constant 0 : index
    %352 = vector.load %arg8[%351, %c0_100] : memref<64x128xf32, #tpu.memory_space<vmem>>, vector<8x128xf32>
    %cst_101 = arith.constant dense<0.000000e+00> : vector<8x128xf32>
    %353 = tpu.matmul %348, %205, %cst_101 {dimension_numbers = #tpu.dot_dimension_numbers<[1], [0], [0], [1], [0, 0, 1, 1], [], []>} : vector<8x32xf32>, vector<32x128xf32>, vector<8x128xf32> -> vector<8x128xf32>
    %354 = arith.addf %352, %353 : vector<8x128xf32>
    %355 = vector.extract_strided_slice %354 {offsets = [0, 0], sizes = [8, 96], strides = [1, 1]} : vector<8x128xf32> to vector<8x96xf32>
    %356 = arith.negf %355 : vector<8x96xf32>
    %357 = math.exp %356 : vector<8x96xf32>
    %cst_102 = arith.constant 1.000000e+00 : f32
    %358 = vector.broadcast %cst_102 : f32 to vector<8x96xf32>
    %359 = arith.addf %358, %357 : vector<8x96xf32>
    %360 = arith.divf %358, %359 : vector<8x96xf32>
    %361 = vector.extract_strided_slice %354 {offsets = [0, 96], sizes = [8, 32], strides = [1, 1]} : vector<8x128xf32> to vector<8x32xf32>
    %362 = math.tanh %361 : vector<8x32xf32>
    %363 = vector.extract_strided_slice %360 {offsets = [0, 0], sizes = [8, 32], strides = [1, 1]} : vector<8x96xf32> to vector<8x32xf32>
    %364 = vector.extract_strided_slice %360 {offsets = [0, 32], sizes = [8, 32], strides = [1, 1]} : vector<8x96xf32> to vector<8x32xf32>
    %365 = vector.extract_strided_slice %360 {offsets = [0, 64], sizes = [8, 32], strides = [1, 1]} : vector<8x96xf32> to vector<8x32xf32>
    %366 = arith.mulf %364, %346 : vector<8x32xf32>
    %367 = arith.mulf %363, %362 : vector<8x32xf32>
    %368 = arith.addf %366, %367 : vector<8x32xf32>
    %369 = math.tanh %368 : vector<8x32xf32>
    %370 = arith.mulf %365, %369 : vector<8x32xf32>
    %c7_i32_103 = arith.constant 7 : i32
    %c8_i32_104 = arith.constant 8 : i32
    %371 = arith.muli %c7_i32_103, %c8_i32_104 : i32
    %372 = tpu.assume_multiple %371, 8 : i32
    %373 = arith.index_cast %372 : i32 to index
    %c0_105 = arith.constant 0 : index
    %374 = vector.load %arg8[%373, %c0_105] : memref<64x128xf32, #tpu.memory_space<vmem>>, vector<8x128xf32>
    %cst_106 = arith.constant dense<0.000000e+00> : vector<8x128xf32>
    %375 = tpu.matmul %370, %205, %cst_106 {dimension_numbers = #tpu.dot_dimension_numbers<[1], [0], [0], [1], [0, 0, 1, 1], [], []>} : vector<8x32xf32>, vector<32x128xf32>, vector<8x128xf32> -> vector<8x128xf32>
    %376 = arith.addf %374, %375 : vector<8x128xf32>
    %377 = vector.extract_strided_slice %376 {offsets = [0, 0], sizes = [8, 96], strides = [1, 1]} : vector<8x128xf32> to vector<8x96xf32>
    %378 = arith.negf %377 : vector<8x96xf32>
    %379 = math.exp %378 : vector<8x96xf32>
    %cst_107 = arith.constant 1.000000e+00 : f32
    %380 = vector.broadcast %cst_107 : f32 to vector<8x96xf32>
    %381 = arith.addf %380, %379 : vector<8x96xf32>
    %382 = arith.divf %380, %381 : vector<8x96xf32>
    %383 = vector.extract_strided_slice %376 {offsets = [0, 96], sizes = [8, 32], strides = [1, 1]} : vector<8x128xf32> to vector<8x32xf32>
    %384 = math.tanh %383 : vector<8x32xf32>
    %385 = vector.extract_strided_slice %382 {offsets = [0, 0], sizes = [8, 32], strides = [1, 1]} : vector<8x96xf32> to vector<8x32xf32>
    %386 = vector.extract_strided_slice %382 {offsets = [0, 32], sizes = [8, 32], strides = [1, 1]} : vector<8x96xf32> to vector<8x32xf32>
    %387 = vector.extract_strided_slice %382 {offsets = [0, 64], sizes = [8, 32], strides = [1, 1]} : vector<8x96xf32> to vector<8x32xf32>
    %388 = arith.mulf %386, %368 : vector<8x32xf32>
    %389 = arith.mulf %385, %384 : vector<8x32xf32>
    %390 = arith.addf %388, %389 : vector<8x32xf32>
    %391 = math.tanh %390 : vector<8x32xf32>
    %392 = arith.mulf %387, %391 : vector<8x32xf32>
    %c8_i32_108 = arith.constant 8 : i32
    %c0_109 = arith.constant 0 : index
    %c0_110 = arith.constant 0 : index
    %393 = vector.load %arg5[%c0_109, %c0_110] : memref<32x4xf32, #tpu.memory_space<vmem>>, vector<32x4xf32>
    %cst_111 = arith.constant dense<0.000000e+00> : vector<8x4xf32>
    %394 = tpu.matmul %392, %393, %cst_111 {dimension_numbers = #tpu.dot_dimension_numbers<[1], [0], [0], [1], [0, 0, 1, 1], [], []>} : vector<8x32xf32>, vector<32x4xf32>, vector<8x4xf32> -> vector<8x4xf32>
    %c0_112 = arith.constant 0 : index
    %c0_113 = arith.constant 0 : index
    %395 = vector.load %arg6[%c0_112, %c0_113] : memref<1x4xf32, #tpu.memory_space<vmem>>, vector<1x4xf32>
    %396 = vector.broadcast %395 : vector<1x4xf32> to vector<8x4xf32>
    %397 = arith.addf %394, %396 : vector<8x4xf32>
    %c0_114 = arith.constant 0 : index
    %c0_115 = arith.constant 0 : index
    %398 = vector.load %arg7[%c0_114, %c0_115] : memref<8x4xf32, #tpu.memory_space<vmem>>, vector<8x4xf32>
    tpu.vector_store %arg7[%c0_114, %c0_115], %397 {strides = array<i32>} : memref<8x4xf32, #tpu.memory_space<vmem>>, vector<8x4xf32>,
    return
  }
}

</mosaic_0001>

<bundles_post_ra>
// kernel: lstm_model_forward.1
= control target key start
LH: loop header
LB: loop body
LE: loop exit
PB: predicated region body
PF: predicated region fallthrough
CT: control target
= control target key end

     0   :  { %vm47_vm0 = vcmask 130048   ;;  %v2714_v0 = vmov 0.0|0.0   ;;  %vm2715_vm1 = vmmov 0   ;;  %v2716_v4 = vmov 0.0   ;;  %s2717_s18 = smov 32   ;;  %s2718_s19 = smov 64   ;;  %s3119_s1 = inlined_call_operand.vmem [shape: f32[16,128], index: 1, kind: input, shape index: {}]   ;;  %s3120_s3 = inlined_call_operand.vmem [shape: f32[2,32,128], index: 3, kind: input, shape index: {}]   ;;  %s3121_s0 = inlined_call_operand.vmem [shape: f32[64,16], index: 0, kind: input, shape index: {}]   ;;  %s3122_s4 = inlined_call_operand.vmem [shape: f32[2,1,128], index: 4, kind: input, shape index: {}]   ;;  %s3123_s2 = inlined_call_operand.vmem [shape: f32[1,32,128], index: 2, kind: input, shape index: {}]   ;;  %s3124_s5 = inlined_call_operand.vmem [shape: f32[32,4], index: 5, kind: input, shape index: {}]   ;;  %s3125_s6 = inlined_call_operand.vmem [shape: f32[1,4], index: 6, kind: input, shape index: {}]   ;;  %s3126_s7 = inlined_call_operand.vmem [shape: f32[8,4], index: 7, kind: output, shape index: {}]  }
   0x1   :  { %2471 = vmatprep.subr.bf16.mxu1 %v2714_v0  ;;  %v39_v1 = vld [vmem:[%s3119_s1] sm:$0xff]  ;;  %v40_v2 = vld [vmem:[%s3119_s1 + $0x8] sm:$0xff]  ;;  %2268 = vmatprep.mubr.msk.f32.mxu1 %vm2715_vm1, %v2716_v4  ;;  %v28_v9 = vld [vmem:[%s3120_s3 + $0x10] sm:$0xff]  ;;  %vm186_vm2 = vcmask 261120   ;;  %vm2076_vm3 = vcmask 31744  }
   0x2   :  { %v26_v3 = vld [vmem:[%s3120_s3] sm:$0xff]  ;;  %v2467_v5 = vpack.c.bf16 %v40_v2, %v39_v1  ;;  %v27_v6 = vld [vmem:[%s3120_s3 + $0x8] sm:$0xff]  ;;  %v29_v10 = vld [vmem:[%s3120_s3 + $0x18] sm:$0xff] }
   0x3   :  { %v31_v7 = vld [vmem:[%s3121_s0] sm:$0xff]  ;;  %v2777_v8 = vpack.c.bf16 %v27_v6, %v26_v3  ;;  %v32_v11 = vld [vmem:[%s3121_s0 + $0x8] sm:$0xff]  ;;  %v2790_v12 = vpack.c.bf16 %v29_v10, %v28_v9  ;;  %v33_v48 = vld [vmem:[%s3121_s0 + $0x10] sm:$0xff] }
   0x4   :  { %2248 = vmatprep.mubr.msk.f32.mxu0 %vm47_vm0, %v31_v7  ;;  %2468 = vmatprep.subr.bf16.mxu0 %v2467_v5  ;;  %v2811_v13 = vld [vmem:[%s3122_s4] ss:$0 sm:$0xff]  ;;  %v34_v49 = vld [vmem:[%s3121_s0 + $0x18] sm:$0xff]  ;;  %v36_v51 = vld [vmem:[%s3121_s0 + $0x28] sm:$0xff] }
   0x5   :  { %2473 = vmatpush3.bf16.msra.mxu1 %v2777_v8  ;;  %2470 = vmatpush3.bf16.msra.mxu0 %v2467_v5  ;;  %v35_v50 = vld [vmem:[%s3121_s0 + $0x20] sm:$0xff]  ;;  %v37_v52 = vld [vmem:[%s3121_s0 + $0x30] sm:$0xff]  ;;  %v38_v53 = vld [vmem:[%s3121_s0 + $0x38] sm:$0xff] }
   0x6   :  { %2474 = vmatprep.subr.bf16.mxu1 %v2714_v0  ;;  %2483 = vmatprep.subr.bf16.mxu0 %v2714_v0 }
   0x8   :  { %2249 = vmatmul.mubr.msk.f32.vlgmr.msra.gmra.mrb[0].mxu0 %vm47_vm0, %v32_v11 }
   0x9   :  { %2476 = vmatpush3.bf16.msra.mxu1 %v2790_v12  ;;  %2485 = vmatpush3.bf16.msra.mxu0 %v2777_v8 }
   0xa   :  { %2477 = vmatprep.subr.bf16.mxu1 %v2714_v0  ;;  %2486 = vmatprep.subr.bf16.mxu0 %v2714_v0 }
   0xb   :  { %2251 = vmatprep.mubr.msk.f32.mxu0 %vm47_vm0, %v33_v48 }
   0xc   :  { %2269 = vmatmul.mubr.f32.vlgmr.msra.gmra.mrb[0].mxu1 %v2716_v4  ;;  %2252 = vmatmul.mubr.msk.f32.gmra.mrb[2].mxu0 %vm47_vm0, %v34_v49 }
   0xd   :  { %2479 = vmatpush3.bf16.msra.mxu1 %v2777_v8  ;;  %2279 = vmatprep.mubr.msk.f32.mxu1 %vm2715_vm1, %v2716_v4 }
   0xe   :  { %2480 = vmatprep.subr.bf16.mxu1 %v2714_v0  ;;  %2488 = vmatpush3.bf16.msra.mxu0 %v2790_v12 }
   0xf   :  { %2495 = vmatprep.subr.bf16.mxu0 %v2714_v0  ;;  %2254 = vmatprep.mubr.msk.f32.mxu0 %vm47_vm0, %v35_v50 }
  0x10   :  { %2255 = vmatmul.mubr.msk.f32.gmra.mrb[4].mxu0 %vm47_vm0, %v36_v51 }
  0x11   :  { %2482 = vmatpush3.bf16.msra.mxu1 %v2790_v12  ;;  %2257 = vmatprep.mubr.msk.f32.mxu0 %vm47_vm0, %v37_v52 }
  0x12   :  { %2489 = vmatprep.subr.bf16.mxu1 %v2714_v0 }
  0x14   :  { %2258 = vmatmul.mubr.msk.f32.gmra.mrb[6].mxu0 %vm47_vm0, %v38_v53 }
  0x15   :  { %2290 = vmatprep.mubr.msk.f32.mxu0 %vm2715_vm1, %v2716_v4 }
  0xdb   :  { %v2250_v14 = vpop.f32.mrb[0].mxu0 }
  0xdc   :  { %v138_v15 = vpop.f32.mrb[1].mxu0  ;;  %v144_v34 = vadd.f32 %v2250_v14, %v2811_v13 }
  0xdd   :  { %v139_v16 = vadd.f32 %v2811_v13, %v138_v15 }
  0xdf   :  { %v256_v17 = vpop.f32.mrb[0].mxu1  ;;  %v2253_v57 = vpop.f32.mrb[2].mxu0 }
  0xe0   :  { %v260_v18 = vadd.f32 %v256_v17, %v139_v16  ;;  %v2270_v19 = vpop.f32.mrb[1].mxu1  ;;  %v148_v58 = vpop.f32.mrb[3].mxu0 }
  0xe1   :  { %v149_v1 = vadd.f32 %v2811_v13, %v148_v58 }
  0xe2   :  { %2586 = vtanh.f32 %v260_v18  ;;  %v2091_v21 = vmul.f32 -1.442695, %v260_v18 }
  0xe3   :  { %v2857_v59 = vpop.f32.mrb[4].mxu0 }
  0xe4   :  { %2588 = vpow2.f32 %v2091_v21  ;;  %v2859_v60 = vpop.f32.mrb[5].mxu0 }
  0xe7   :  { %v2861_v61 = vpop.f32.mrb[6].mxu0 }
  0xe8   :  { %v2863_v62 = vpop.f32.mrb[7].mxu0 }
  0xec   :  { %v2587_v20 = vpop.eup %2586 }
  0xed   :  { %270 = vrot.lane.b32.xlu0 %v2587_v20, %s2717_s18 }
  0xee   :  { %v2589_v22 = vpop.eup %2588 }
  0xef   :  { %v264_v23 = vadd.f32 1.0, %v2589_v22 }
  0xf1   :  { %2590 = vrcp.f32 %v264_v23  ;;  %v154_v23 = vadd.f32 %v2253_v57, %v2811_v13 }
  0xfb   :  { %v2591_v24 = vpop.eup %2590 }
  0xfc   :  { %v268_v27 = vmul.f32 0.0, %v2591_v24 }
 0x15f   :  { %v271_v25 = vpop.permute.xlu0 %270 }
 0x160   :  { %v273_v26 = vmul.f32 %v2591_v24, %v271_v25 }
 0x162   :  { %275 = vrot.lane.b32.xlu0 %v273_v26, %s2717_s18 }
 0x1d4   :  { %v276_v28 = vpop.permute.xlu0 %275 }
 0x1d5   :  { %v278_v29 = vadd.f32 %v276_v28, %v268_v27 }
 0x1d7   :  { %2592 = vtanh.f32 %v278_v29 }
 0x1e1   :  { %v2593_v30 = vpop.eup %2592 }
 0x1e2   :  { %281 = vrot.lane.b32.xlu1 %v2593_v30, %s2717_s18 }
 0x254   :  { %v282_v31 = vpop.permute.xlu1 %281 }
 0x255   :  { %v284_v32 = vmul.f32 %v2591_v24, %v282_v31 }
 0x257   :  { %286 = vrot.lane.b32.xlu1 %v284_v32, %s2718_s19 }
 0x2c9   :  { %v287_v33 = vpop.permute.xlu1 %286 }
 0x2ca   :  { %289 = vst.msk [vmem:[#allocation3] sm:$0xff] %vm186_vm2, %v287_v33  ;;  %2280 = vmatmul.mubr.msk.f32.vlgmr.msra.gmra.mrb[2].mxu1 %vm186_vm2, %v287_v33 }
 0x2cb   :  { %2491 = vmatpush3.bf16.msra.mxu1 %v2777_v8  ;;  %2301 = vmatprep.mubr.msk.f32.mxu1 %vm2715_vm1, %v2716_v4 }
 0x2cc   :  { %2492 = vmatprep.subr.bf16.mxu1 %v2714_v0 }
 0x2cf   :  { %2494 = vmatpush3.bf16.msra.mxu1 %v2790_v12 }
 0x2d0   :  { %2501 = vmatprep.subr.bf16.mxu1 %v2714_v0 }
 0x39d   :  { %v360_v35 = vpop.f32.mrb[2].mxu1 }
 0x39e   :  { %v364_v36 = vadd.f32 %v360_v35, %v144_v34  ;;  %v2281_v37 = vpop.f32.mrb[3].mxu1 }
 0x3a0   :  { %2594 = vtanh.f32 %v364_v36  ;;  %v2093_v39 = vmul.f32 -1.442695, %v364_v36 }
 0x3a2   :  { %2596 = vpow2.f32 %v2093_v39 }
 0x3aa   :  { %v2595_v38 = vpop.eup %2594 }
 0x3ab   :  { %374 = vrot.lane.b32.xlu0 %v2595_v38, %s2717_s18 }
 0x3ac   :  { %v2597_v40 = vpop.eup %2596 }
 0x3ad   :  { %v368_v41 = vadd.f32 1.0, %v2597_v40 }
 0x3af   :  { %2598 = vrcp.f32 %v368_v41  ;;  %v159_v41 = vadd.f32 %v2811_v13, %v2859_v60  ;;  %v164_v60 = vadd.f32 %v2857_v59, %v2811_v13 }
 0x3b9   :  { %v2599_v42 = vpop.eup %2598 }
 0x3ba   :  { %v372_v45 = vmul.f32 %v2599_v42, %v278_v29 }
 0x41d   :  { %v375_v43 = vpop.permute.xlu0 %374 }
 0x41e   :  { %v377_v44 = vmul.f32 %v2599_v42, %v375_v43 }
 0x420   :  { %379 = vrot.lane.b32.xlu1 %v377_v44, %s2717_s18 }
 0x492   :  { %v380_v46 = vpop.permute.xlu1 %379 }
 0x493   :  { %v382_v47 = vadd.f32 %v380_v46, %v372_v45 }
 0x495   :  { %2600 = vtanh.f32 %v382_v47 }
 0x49f   :  { %v2601_v54 = vpop.eup %2600 }
 0x4a0   :  { %385 = vrot.lane.b32.xlu0 %v2601_v54, %s2717_s18 }
 0x512   :  { %v386_v55 = vpop.permute.xlu0 %385 }
 0x513   :  { %v388_v56 = vmul.f32 %v2599_v42, %v386_v55 }
 0x515   :  { %390 = vrot.lane.b32.xlu1 %v388_v56, %s2718_s19 }
 0x587   :  { %v391_v63 = vpop.permute.xlu1 %390 }
 0x588   :  { %394 = vst.msk [vmem:[#allocation3 + $0x8] sm:$0xff] %vm186_vm2, %v391_v63  ;;  %2291 = vmatmul.mubr.msk.f32.vlgmr.msra.gmra.mrb[8].mxu0 %vm186_vm2, %v391_v63 }
 0x589   :  { %2497 = vmatpush3.bf16.msra.mxu0 %v2777_v8  ;;  %2312 = vmatprep.mubr.msk.f32.mxu0 %vm2715_vm1, %v2716_v4 }
 0x58a   :  { %2498 = vmatprep.subr.bf16.mxu0 %v2714_v0 }
 0x58d   :  { %2500 = vmatpush3.bf16.msra.mxu0 %v2790_v12 }
 0x58e   :  { %2507 = vmatprep.subr.bf16.mxu0 %v2714_v0 }
 0x65b   :  { %v465_v2 = vpop.f32.mrb[8].mxu0 }
 0x65c   :  { %v469_v3 = vadd.f32 %v465_v2, %v149_v1  ;;  %v2292_v5 = vpop.f32.mrb[9].mxu0 }
 0x65e   :  { %2602 = vtanh.f32 %v469_v3  ;;  %v2095_v7 = vmul.f32 -1.442695, %v469_v3 }
 0x660   :  { %2604 = vpow2.f32 %v2095_v7 }
 0x668   :  { %v2603_v6 = vpop.eup %2602 }
 0x669   :  { %479 = vrot.lane.b32.xlu0 %v2603_v6, %s2717_s18 }
 0x66a   :  { %v2605_v9 = vpop.eup %2604 }
 0x66b   :  { %v473_v10 = vadd.f32 1.0, %v2605_v9 }
 0x66d   :  { %2606 = vrcp.f32 %v473_v10 }
 0x677   :  { %v2607_v11 = vpop.eup %2606 }
 0x678   :  { %v477_v16 = vmul.f32 %v2607_v11, %v382_v47 }
 0x6db   :  { %v480_v14 = vpop.permute.xlu0 %479 }
 0x6dc   :  { %v482_v15 = vmul.f32 %v2607_v11, %v480_v14  ;;  %v1040_v14 = vld [vmem:[%s3123_s2] sm:$0xff] }
 0x6de   :  { %484 = vrot.lane.b32.xlu1 %v482_v15, %s2717_s18  ;;  %v1041_v15 = vld [vmem:[%s3123_s2 + $0x8] sm:$0xff] }
 0x750   :  { %v485_v17 = vpop.permute.xlu1 %484 }
 0x751   :  { %v487_v18 = vadd.f32 %v485_v17, %v477_v16  ;;  %v2519_v16 = vpack.c.bf16 %v1041_v15, %v1040_v14 }
 0x753   :  { %2608 = vtanh.f32 %v487_v18 }
 0x75d   :  { %v2609_v19 = vpop.eup %2608 }
 0x75e   :  { %490 = vrot.lane.b32.xlu0 %v2609_v19, %s2717_s18 }
 0x7d0   :  { %v491_v20 = vpop.permute.xlu0 %490 }
 0x7d1   :  { %v493_v21 = vmul.f32 %v2607_v11, %v491_v20  ;;  %v1042_v20 = vld [vmem:[%s3123_s2 + $0x10] sm:$0xff] }
 0x7d3   :  { %495 = vrot.lane.b32.xlu1 %v493_v21, %s2718_s19  ;;  %v1043_v21 = vld [vmem:[%s3123_s2 + $0x18] sm:$0xff] }
 0x845   :  { %v496_v22 = vpop.permute.xlu1 %495 }
 0x846   :  { %499 = vst.msk [vmem:[#allocation3 + $0x10] sm:$0xff] %vm186_vm2, %v496_v22  ;;  %2302 = vmatmul.mubr.msk.f32.vlgmr.msra.gmra.mrb[4].mxu1 %vm186_vm2, %v496_v22  ;;  %v2523_v22 = vpack.c.bf16 %v1043_v21, %v1042_v20 }
 0x847   :  { %2503 = vmatpush3.bf16.msra.mxu1 %v2777_v8  ;;  %2323 = vmatprep.mubr.msk.f32.mxu1 %vm2715_vm1, %v2716_v4 }
 0x848   :  { %2504 = vmatprep.subr.bf16.mxu1 %v2714_v0 }
 0x84b   :  { %2506 = vmatpush3.bf16.msra.mxu1 %v2790_v12 }
 0x84c   :  { %2513 = vmatprep.subr.bf16.mxu1 %v2714_v0 }
 0x919   :  { %v570_v24 = vpop.f32.mrb[4].mxu1 }
 0x91a   :  { %v574_v25 = vadd.f32 %v570_v24, %v154_v23  ;;  %v2303_v26 = vpop.f32.mrb[5].mxu1  ;;  %v1032_v24 = vld [vmem:[#allocation3] sm:$0xff] }
 0x91b   :  { %v1034_v26 = vld [vmem:[#allocation3 + $0x10] sm:$0xff] }
 0x91c   :  { %2610 = vtanh.f32 %v574_v25  ;;  %v2097_v28 = vmul.f32 -1.442695, %v574_v25  ;;  %v1033_v25 = vld [vmem:[#allocation3 + $0x8] sm:$0xff] }
 0x91e   :  { %2612 = vpow2.f32 %v2097_v28 }
 0x926   :  { %v2611_v27 = vpop.eup %2610 }
 0x927   :  { %584 = vrot.lane.b32.xlu0 %v2611_v27, %s2717_s18 }
 0x928   :  { %v2613_v29 = vpop.eup %2612 }
 0x929   :  { %v578_v30 = vadd.f32 1.0, %v2613_v29 }
 0x92b   :  { %2614 = vrcp.f32 %v578_v30  ;;  %v169_v30 = vadd.f32 %v2811_v13, %v2863_v62 }
 0x935   :  { %v2615_v31 = vpop.eup %2614 }
 0x936   :  { %v582_v34 = vmul.f32 %v2615_v31, %v487_v18 }
 0x999   :  { %v585_v32 = vpop.permute.xlu0 %584 }
 0x99a   :  { %v587_v33 = vmul.f32 %v2615_v31, %v585_v32 }
 0x99c   :  { %589 = vrot.lane.b32.xlu1 %v587_v33, %s2717_s18 }
 0xa0e   :  { %v590_v35 = vpop.permute.xlu1 %589 }
 0xa0f   :  { %v592_v36 = vadd.f32 %v590_v35, %v582_v34 }
 0xa11   :  { %2616 = vtanh.f32 %v592_v36 }
 0xa1b   :  { %v2617_v37 = vpop.eup %2616 }
 0xa1c   :  { %595 = vrot.lane.b32.xlu0 %v2617_v37, %s2717_s18 }
 0xa8e   :  { %v596_v38 = vpop.permute.xlu0 %595 }
 0xa8f   :  { %v598_v39 = vmul.f32 %v2615_v31, %v596_v38 }
 0xa91   :  { %600 = vrot.lane.b32.xlu1 %v598_v39, %s2718_s19 }
 0xb03   :  { %v601_v40 = vpop.permute.xlu1 %600 }
 0xb04   :  { %604 = vst.msk [vmem:[#allocation3 + $0x18] sm:$0xff] %vm186_vm2, %v601_v40  ;;  %2313 = vmatmul.mubr.msk.f32.vlgmr.msra.gmra.mrb[10].mxu0 %vm186_vm2, %v601_v40 }
 0xb05   :  { %2509 = vmatpush3.bf16.msra.mxu0 %v2777_v8  ;;  %2334 = vmatprep.mubr.msk.f32.mxu0 %vm2715_vm1, %v2716_v4 }
 0xb06   :  { %2510 = vmatprep.subr.bf16.mxu0 %v2714_v0 }
 0xb09   :  { %2512 = vmatpush3.bf16.msra.mxu0 %v2790_v12 }
 0xb0a   :  { %2520 = vmatprep.subr.bf16.mxu0 %v2519_v16 }
 0xb0b   :  { %v1035_v27 = vld [vmem:[#allocation3 + $0x18] sm:$0xff] }
 0xbd7   :  { %v675_v42 = vpop.f32.mrb[10].mxu0 }
 0xbd8   :  { %v679_v43 = vadd.f32 %v675_v42, %v159_v41  ;;  %v2314_v44 = vpop.f32.mrb[11].mxu0 }
 0xbda   :  { %2618 = vtanh.f32 %v679_v43  ;;  %v2099_v46 = vmul.f32 -1.442695, %v679_v43 }
 0xbdc   :  { %2620 = vpow2.f32 %v2099_v46 }
 0xbe4   :  { %v2619_v45 = vpop.eup %2618 }
 0xbe5   :  { %689 = vrot.lane.b32.xlu0 %v2619_v45, %s2717_s18 }
 0xbe6   :  { %v2621_v47 = vpop.eup %2620 }
 0xbe7   :  { %v683_v48 = vadd.f32 1.0, %v2621_v47 }
 0xbe9   :  { %2622 = vrcp.f32 %v683_v48 }
 0xbf3   :  { %v2623_v49 = vpop.eup %2622 }
 0xbf4   :  { %v687_v52 = vmul.f32 %v2623_v49, %v592_v36 }
 0xc57   :  { %v690_v50 = vpop.permute.xlu0 %689 }
 0xc58   :  { %v692_v51 = vmul.f32 %v2623_v49, %v690_v50  ;;  %v2106_v50 = vld [vmem:[%s3120_s3 + $0x20] sm:$0xff] }
 0xc5a   :  { %694 = vrot.lane.b32.xlu1 %v692_v51, %s2717_s18  ;;  %v2107_v51 = vld [vmem:[%s3120_s3 + $0x28] sm:$0xff] }
 0xccc   :  { %v695_v53 = vpop.permute.xlu1 %694 }
 0xccd   :  { %v697_v54 = vadd.f32 %v695_v53, %v687_v52  ;;  %v2963_v52 = vpack.c.bf16 %v2107_v51, %v2106_v50  ;;  %v2108_v53 = vld [vmem:[%s3120_s3 + $0x30] sm:$0xff] }
 0xccf   :  { %2624 = vtanh.f32 %v697_v54 }
 0xcd9   :  { %v2625_v55 = vpop.eup %2624 }
 0xcda   :  { %700 = vrot.lane.b32.xlu0 %v2625_v55, %s2717_s18 }
 0xd4c   :  { %v701_v56 = vpop.permute.xlu0 %700 }
 0xd4d   :  { %v703_v57 = vmul.f32 %v2623_v49, %v701_v56 }
 0xd4f   :  { %705 = vrot.lane.b32.xlu1 %v703_v57, %s2718_s19 }
 0xdc1   :  { %v706_v58 = vpop.permute.xlu1 %705 }
 0xdc2   :  { %709 = vst.msk [vmem:[#allocation3 + $0x20] sm:$0xff] %vm186_vm2, %v706_v58  ;;  %2324 = vmatmul.mubr.msk.f32.vlgmr.msra.gmra.mrb[6].mxu1 %vm186_vm2, %v706_v58 }
 0xdc3   :  { %2515 = vmatpush3.bf16.msra.mxu1 %v2777_v8  ;;  %2345 = vmatprep.mubr.msk.f32.mxu1 %vm2715_vm1, %v2716_v4 }
 0xdc4   :  { %2516 = vmatprep.subr.bf16.mxu1 %v2714_v0 }
 0xdc7   :  { %2518 = vmatpush3.bf16.msra.mxu1 %v2790_v12 }
 0xdc8   :  { %2527 = vmatprep.subr.bf16.mxu1 %v2714_v0 }
 0xdc9   :  { %v1036_v28 = vld [vmem:[#allocation3 + $0x20] sm:$0xff] }
 0xe95   :  { %v780_v63 = vpop.f32.mrb[6].mxu1 }
 0xe96   :  { %v784_v1 = vadd.f32 %v780_v63, %v164_v60  ;;  %v2325_v2 = vpop.f32.mrb[7].mxu1  ;;  %v174_v63 = vadd.f32 %v2861_v61, %v2811_v13 }
 0xe98   :  { %2626 = vtanh.f32 %v784_v1  ;;  %v2101_v8 = vmul.f32 -1.442695, %v784_v1 }
 0xe9a   :  { %2628 = vpow2.f32 %v2101_v8  ;;  %v2999_v8 = vld [vmem:[%s3122_s4 + $0x1] ss:$0 sm:$0xff] }
 0xea2   :  { %v2627_v3 = vpop.eup %2626 }
 0xea3   :  { %794 = vrot.lane.b32.xlu0 %v2627_v3, %s2717_s18 }
 0xea4   :  { %v2629_v5 = vpop.eup %2628 }
 0xea5   :  { %v788_v6 = vadd.f32 1.0, %v2629_v5 }
 0xea7   :  { %2630 = vrcp.f32 %v788_v6 }
 0xeb1   :  { %v2631_v7 = vpop.eup %2630 }
 0xeb2   :  { %v792_v10 = vmul.f32 %v2631_v7, %v697_v54  ;;  %v2109_v54 = vld [vmem:[%s3120_s3 + $0x38] sm:$0xff] }
 0xeb3   :  { %v2973_v55 = vpack.c.bf16 %v2109_v54, %v2108_v53 }
 0xf15   :  { %v795_v9 = vpop.permute.xlu0 %794 }
 0xf16   :  { %v797_v12 = vmul.f32 %v2631_v7, %v795_v9 }
 0xf18   :  { %799 = vrot.lane.b32.xlu1 %v797_v12, %s2717_s18 }
 0xf8a   :  { %v800_v11 = vpop.permute.xlu1 %799 }
 0xf8b   :  { %v802_v59 = vadd.f32 %v800_v11, %v792_v10 }
 0xf8d   :  { %2632 = vtanh.f32 %v802_v59 }
 0xf97   :  { %v2633_v17 = vpop.eup %2632 }
 0xf98   :  { %805 = vrot.lane.b32.xlu0 %v2633_v17, %s2717_s18 }
0x100a   :  { %v806_v18 = vpop.permute.xlu0 %805 }
0x100b   :  { %v808_v19 = vmul.f32 %v2631_v7, %v806_v18 }
0x100d   :  { %810 = vrot.lane.b32.xlu1 %v808_v19, %s2718_s19 }
0x107f   :  { %v811_v23 = vpop.permute.xlu1 %810 }
0x1080   :  { %814 = vst.msk [vmem:[#allocation3 + $0x28] sm:$0xff] %vm186_vm2, %v811_v23  ;;  %2335 = vmatmul.mubr.msk.f32.vlgmr.msra.gmra.mrb[12].mxu0 %vm186_vm2, %v811_v23 }
0x1081   :  { %2522 = vmatpush3.bf16.msra.mxu0 %v2519_v16  ;;  %2356 = vmatprep.mubr.msk.f32.mxu0 %vm186_vm2, %v1032_v24 }
0x1082   :  { %2524 = vmatprep.subr.bf16.mxu0 %v2523_v22 }
0x1085   :  { %2526 = vmatpush3.bf16.msra.mxu0 %v2523_v22 }
0x1086   :  { %2539 = vmatprep.subr.bf16.mxu0 %v2714_v0 }
0x1087   :  { %v1037_v29 = vld [vmem:[#allocation3 + $0x28] sm:$0xff] }
0x1088   :  { %2357 = vmatmul.mubr.msk.f32.vlgmr.msra.gmra.mrb[14].mxu0 %vm186_vm2, %v1033_v25 }
0x1089   :  { %2359 = vmatprep.mubr.msk.f32.mxu0 %vm186_vm2, %v1034_v26  ;;  %2541 = vmatpush3.bf16.msra.mxu0 %v2963_v52 }
0x108a   :  { %2542 = vmatprep.subr.bf16.mxu0 %v2714_v0 }
0x108c   :  { %2360 = vmatmul.mubr.msk.f32.gmra.mrb[16].mxu0 %vm186_vm2, %v1035_v27 }
0x108d   :  { %2362 = vmatprep.mubr.msk.f32.mxu0 %vm186_vm2, %v1036_v28  ;;  %2544 = vmatpush3.bf16.msra.mxu0 %v2973_v55 }
0x108e   :  { %2551 = vmatprep.subr.bf16.mxu0 %v2714_v0 }
0x1090   :  { %2363 = vmatmul.mubr.msk.f32.gmra.mrb[18].mxu0 %vm186_vm2, %v1037_v29 }
0x1153   :  { %v885_v31 = vpop.f32.mrb[12].mxu0 }
0x1154   :  { %v889_v32 = vadd.f32 %v885_v31, %v169_v30  ;;  %v2336_v33 = vpop.f32.mrb[13].mxu0 }
0x1156   :  { %2634 = vtanh.f32 %v889_v32  ;;  %v2103_v41 = vmul.f32 -1.442695, %v889_v32 }
0x1158   :  { %2636 = vpow2.f32 %v2103_v41 }
0x115b   :  { %v2941_v34 = vpop.f32.mrb[14].mxu0 }
0x115c   :  { %v1140_v35 = vpop.f32.mrb[15].mxu0 }
0x115d   :  { %v1141_v5 = vadd.f32 %v2999_v8, %v1140_v35 }
0x115f   :  { %v2943_v36 = vpop.f32.mrb[16].mxu0 }
0x1160   :  { %v2635_v37 = vpop.eup %2634  ;;  %v2945_v38 = vpop.f32.mrb[17].mxu0 }
0x1161   :  { %899 = vrot.lane.b32.xlu0 %v2635_v37, %s2717_s18  ;;  %v1146_v37 = vadd.f32 %v2941_v34, %v2999_v8 }
0x1162   :  { %v2637_v62 = vpop.eup %2636 }
0x1163   :  { %v2948_v39 = vpop.f32.mrb[18].mxu0  ;;  %v893_v42 = vadd.f32 1.0, %v2637_v62 }
0x1164   :  { %v2950_v40 = vpop.f32.mrb[19].mxu0 }
0x1165   :  { %2638 = vrcp.f32 %v893_v42 }
0x116f   :  { %v2639_v43 = vpop.eup %2638 }
0x1170   :  { %v897_v46 = vmul.f32 %v2639_v43, %v802_v59 }
0x11d3   :  { %v900_v44 = vpop.permute.xlu0 %899 }
0x11d4   :  { %v902_v45 = vmul.f32 %v2639_v43, %v900_v44 }
0x11d6   :  { %904 = vrot.lane.b32.xlu1 %v902_v45, %s2717_s18 }
0x1248   :  { %v905_v47 = vpop.permute.xlu1 %904 }
0x1249   :  { %v2953_v48 = vadd.f32 %v905_v47, %v897_v46 }
0x124b   :  { %2640 = vtanh.f32 %v2953_v48 }
0x1255   :  { %v2641_v49 = vpop.eup %2640 }
0x1256   :  { %910 = vrot.lane.b32.xlu0 %v2641_v49, %s2717_s18 }
0x12c8   :  { %v911_v56 = vpop.permute.xlu0 %910 }
0x12c9   :  { %v913_v57 = vmul.f32 %v2639_v43, %v911_v56 }
0x12cb   :  { %915 = vrot.lane.b32.xlu1 %v913_v57, %s2718_s19 }
0x133d   :  { %v916_v58 = vpop.permute.xlu1 %915 }
0x133e   :  { %919 = vst.msk [vmem:[#allocation3 + $0x30] sm:$0xff] %vm186_vm2, %v916_v58  ;;  %2346 = vmatmul.mubr.msk.f32.vlgmr.msra.gmra.mrb[8].mxu1 %vm186_vm2, %v916_v58 }
0x133f   :  { %2529 = vmatpush3.bf16.msra.mxu1 %v2963_v52  ;;  %2376 = vmatprep.mubr.msk.f32.mxu1 %vm2715_vm1, %v2716_v4 }
0x1340   :  { %2530 = vmatprep.subr.bf16.mxu1 %v2714_v0 }
0x1343   :  { %2532 = vmatpush3.bf16.msra.mxu1 %v2973_v55 }
0x1344   :  { %2533 = vmatprep.subr.bf16.mxu1 %v2714_v0 }
0x1345   :  { %v1038_v60 = vld [vmem:[#allocation3 + $0x30] sm:$0xff] }
0x1346   :  { %2377 = vmatmul.mubr.f32.vlgmr.msra.gmra.mrb[10].mxu1 %v2716_v4  ;;  %2365 = vmatprep.mubr.msk.f32.mxu0 %vm186_vm2, %v1038_v60 }
0x1347   :  { %2535 = vmatpush3.bf16.msra.mxu1 %v2963_v52  ;;  %2387 = vmatprep.mubr.msk.f32.mxu1 %vm2715_vm1, %v2716_v4 }
0x1348   :  { %2536 = vmatprep.subr.bf16.mxu1 %v2714_v0 }
0x134b   :  { %2538 = vmatpush3.bf16.msra.mxu1 %v2973_v55 }
0x134c   :  { %2545 = vmatprep.subr.bf16.mxu1 %v2714_v0 }
0x1411   :  { %v990_v1 = vpop.f32.mrb[8].mxu1 }
0x1412   :  { %v994_v2 = vadd.f32 %v990_v1, %v174_v63  ;;  %v2347_v3 = vpop.f32.mrb[9].mxu1 }
0x1414   :  { %v2105_v20 = vmul.f32 -1.442695, %v994_v2 }
0x1419   :  { %v1254_v6 = vpop.f32.mrb[10].mxu1 }
0x141a   :  { %v1258_v7 = vadd.f32 %v1254_v6, %v1141_v5  ;;  %v2378_v9 = vpop.f32.mrb[11].mxu1 }
0x141c   :  { %2642 = vtanh.f32 %v1258_v7  ;;  %v2120_v10 = vmul.f32 -1.442695, %v1258_v7 }
0x141e   :  { %2644 = vpow2.f32 %v2120_v10 }
0x1426   :  { %v2643_v12 = vpop.eup %2642 }
0x1427   :  { %1268 = vrot.lane.b32.xlu0 %v2643_v12, %s2717_s18 }
0x1428   :  { %v2645_v13 = vpop.eup %2644 }
0x1429   :  { %v1262_v61 = vadd.f32 1.0, %v2645_v13 }
0x142b   :  { %2646 = vrcp.f32 %v1262_v61 }
0x1435   :  { %v2647_v11 = vpop.eup %2646 }
0x1436   :  { %v1266_v15 = vmul.f32 0.0, %v2647_v11 }
0x1499   :  { %v1269_v59 = vpop.permute.xlu0 %1268 }
0x149a   :  { %v1271_v14 = vmul.f32 %v2647_v11, %v1269_v59 }
0x149c   :  { %1273 = vrot.lane.b32.xlu1 %v1271_v14, %s2717_s18 }
0x150e   :  { %v1274_v16 = vpop.permute.xlu1 %1273 }
0x150f   :  { %v1276_v17 = vadd.f32 %v1274_v16, %v1266_v15 }
0x1511   :  { %2648 = vtanh.f32 %v1276_v17 }
0x1512   :  { %2650 = vtanh.f32 %v994_v2  ;;  %v1151_v2 = vadd.f32 %v2999_v8, %v2945_v38 }
0x1513   :  { %2652 = vpow2.f32 %v2105_v20 }
0x151b   :  { %v2649_v18 = vpop.eup %2648 }
0x151c   :  { %1279 = vrot.lane.b32.xlu0 %v2649_v18, %s2717_s18  ;;  %v2651_v19 = vpop.eup %2650 }
0x151d   :  { %v2653_v21 = vpop.eup %2652 }
0x151e   :  { %v998_v22 = vadd.f32 1.0, %v2653_v21 }
0x1520   :  { %1004 = vrot.lane.b32.xlu0 %v2651_v19, %s2717_s18  ;;  %2654 = vrcp.f32 %v998_v22  ;;  %v1156_v19 = vadd.f32 %v2943_v36, %v2999_v8 }
0x152a   :  { %v2655_v25 = vpop.eup %2654 }
0x152b   :  { %v1002_v29 = vmul.f32 %v2655_v25, %v2953_v48 }
0x158e   :  { %v1280_v23 = vpop.permute.xlu0 %1279 }
0x158f   :  { %v1282_v24 = vmul.f32 %v2647_v11, %v1280_v23 }
0x1591   :  { %1285 = vrot.lane.b32.xlu1 %v1282_v24, %s2718_s19 }
0x1592   :  { %v1005_v26 = vpop.permute.xlu0 %1004 }
0x1593   :  { %v1007_v27 = vmul.f32 %v2655_v25, %v1005_v26 }
0x1595   :  { %1009 = vrot.lane.b32.xlu0 %v1007_v27, %s2717_s18 }
0x1603   :  { %v1286_v28 = vpop.permute.xlu1 %1285 }
0x1604   :  { %2388 = vmatmul.mubr.msk.f32.vlgmr.msra.gmra.mrb[12].mxu1 %vm186_vm2, %v1286_v28 }
0x1605   :  { %2547 = vmatpush3.bf16.msra.mxu1 %v2963_v52  ;;  %2409 = vmatprep.mubr.msk.f32.mxu1 %vm2715_vm1, %v2716_v4 }
0x1606   :  { %2548 = vmatprep.subr.bf16.mxu1 %v2714_v0 }
0x1607   :  { %v1010_v30 = vpop.permute.xlu0 %1009 }
0x1608   :  { %v1012_v31 = vadd.f32 %v1010_v30, %v1002_v29 }
0x1609   :  { %2550 = vmatpush3.bf16.msra.mxu1 %v2973_v55 }
0x160a   :  { %2656 = vtanh.f32 %v1012_v31  ;;  %2557 = vmatprep.subr.bf16.mxu1 %v2714_v0 }
0x1614   :  { %v2657_v32 = vpop.eup %2656 }
0x1615   :  { %1015 = vrot.lane.b32.xlu0 %v2657_v32, %s2717_s18 }
0x1687   :  { %v1016_v33 = vpop.permute.xlu0 %1015 }
0x1688   :  { %v1018_v35 = vmul.f32 %v2655_v25, %v1016_v33 }
0x168a   :  { %1020 = vrot.lane.b32.xlu0 %v1018_v35, %s2718_s19 }
0x16d7   :  { %v1355_v41 = vpop.f32.mrb[12].mxu1 }
0x16d8   :  { %v1359_v62 = vadd.f32 %v1355_v41, %v1146_v37  ;;  %v2389_v42 = vpop.f32.mrb[13].mxu1  ;;  %v1161_v41 = vadd.f32 %v2999_v8, %v2950_v40 }
0x16da   :  { %2658 = vtanh.f32 %v1359_v62  ;;  %v2122_v46 = vmul.f32 -1.442695, %v1359_v62 }
0x16dc   :  { %2660 = vpow2.f32 %v2122_v46 }
0x16e4   :  { %v2659_v43 = vpop.eup %2658 }
0x16e5   :  { %1369 = vrot.lane.b32.xlu1 %v2659_v43, %s2717_s18 }
0x16e6   :  { %v2661_v47 = vpop.eup %2660 }
0x16e7   :  { %v1363_v34 = vadd.f32 1.0, %v2661_v47 }
0x16e9   :  { %2662 = vrcp.f32 %v1363_v34 }
0x16f3   :  { %v2663_v48 = vpop.eup %2662 }
0x16f4   :  { %v1367_v51 = vmul.f32 %v2663_v48, %v1276_v17 }
0x16fc   :  { %v1021_v44 = vpop.permute.xlu0 %1020 }
0x16fd   :  { %1024 = vst.msk [vmem:[#allocation3 + $0x38] sm:$0xff] %vm186_vm2, %v1021_v44 }
0x1704   :  { %v1039_v45 = vld [vmem:[#allocation3 + $0x38] sm:$0xff] }
0x1705   :  { %2366 = vmatmul.mubr.msk.f32.gmra.mrb[20].mxu0 %vm186_vm2, %v1039_v45 }
0x1706   :  { %2398 = vmatprep.mubr.msk.f32.mxu0 %vm2715_vm1, %v2716_v4 }
0x1757   :  { %v1370_v49 = vpop.permute.xlu1 %1369 }
0x1758   :  { %v1372_v50 = vmul.f32 %v2663_v48, %v1370_v49 }
0x175a   :  { %1374 = vrot.lane.b32.xlu1 %v1372_v50, %s2717_s18 }
0x17cc   :  { %v1375_v53 = vpop.permute.xlu1 %1374 }
0x17cd   :  { %v1377_v54 = vadd.f32 %v1375_v53, %v1367_v51 }
0x17cf   :  { %2664 = vtanh.f32 %v1377_v54 }
0x17d8   :  { %v3026_v56 = vpop.f32.mrb[20].mxu0 }
0x17d9   :  { %v2665_v57 = vpop.eup %2664  ;;  %v3028_v58 = vpop.f32.mrb[21].mxu0 }
0x17da   :  { %1380 = vrot.lane.b32.xlu1 %v2665_v57, %s2717_s18 }
0x184c   :  { %v1381_v60 = vpop.permute.xlu1 %1380 }
0x184d   :  { %v1383_v63 = vmul.f32 %v2663_v48, %v1381_v60 }
0x184f   :  { %1386 = vrot.lane.b32.xlu1 %v1383_v63, %s2718_s19  ;;  %v1166_v63 = vadd.f32 %v2948_v39, %v2999_v8 }
0x18c1   :  { %v1387_v1 = vpop.permute.xlu1 %1386 }
0x18c2   :  { %2399 = vmatmul.mubr.msk.f32.vlgmr.msra.gmra.mrb[22].mxu0 %vm186_vm2, %v1387_v1 }
0x18c3   :  { %2553 = vmatpush3.bf16.msra.mxu0 %v2963_v52  ;;  %2420 = vmatprep.mubr.msk.f32.mxu0 %vm2715_vm1, %v2716_v4 }
0x18c4   :  { %2554 = vmatprep.subr.bf16.mxu0 %v2714_v0 }
0x18c7   :  { %2556 = vmatpush3.bf16.msra.mxu0 %v2973_v55 }
0x18c8   :  { %2563 = vmatprep.subr.bf16.mxu0 %v2714_v0 }
0x1995   :  { %v1456_v3 = vpop.f32.mrb[22].mxu0 }
0x1996   :  { %v1460_v5 = vadd.f32 %v1456_v3, %v1151_v2  ;;  %v2400_v6 = vpop.f32.mrb[23].mxu0 }
0x1998   :  { %2666 = vtanh.f32 %v1460_v5  ;;  %v2124_v9 = vmul.f32 -1.442695, %v1460_v5 }
0x199a   :  { %2668 = vpow2.f32 %v2124_v9 }
0x19a2   :  { %v2667_v7 = vpop.eup %2666 }
0x19a3   :  { %1470 = vrot.lane.b32.xlu0 %v2667_v7, %s2717_s18 }
0x19a4   :  { %v2669_v12 = vpop.eup %2668 }
0x19a5   :  { %v1464_v10 = vadd.f32 1.0, %v2669_v12 }
0x19a7   :  { %2670 = vrcp.f32 %v1464_v10 }
0x19b1   :  { %v2671_v13 = vpop.eup %2670 }
0x19b2   :  { %v1468_v59 = vmul.f32 %v2671_v13, %v1377_v54 }
0x1a15   :  { %v1471_v61 = vpop.permute.xlu0 %1470 }
0x1a16   :  { %v1473_v11 = vmul.f32 %v2671_v13, %v1471_v61 }
0x1a18   :  { %1475 = vrot.lane.b32.xlu1 %v1473_v11, %s2717_s18 }
0x1a8a   :  { %v1476_v14 = vpop.permute.xlu1 %1475 }
0x1a8b   :  { %v1478_v38 = vadd.f32 %v1476_v14, %v1468_v59 }
0x1a8d   :  { %2672 = vtanh.f32 %v1478_v38 }
0x1a97   :  { %v2673_v15 = vpop.eup %2672 }
0x1a98   :  { %1481 = vrot.lane.b32.xlu0 %v2673_v15, %s2717_s18 }
0x1b0a   :  { %v1482_v16 = vpop.permute.xlu0 %1481 }
0x1b0b   :  { %v1484_v17 = vmul.f32 %v2671_v13, %v1482_v16 }
0x1b0d   :  { %1487 = vrot.lane.b32.xlu1 %v1484_v17, %s2718_s19 }
0x1b7f   :  { %v1488_v18 = vpop.permute.xlu1 %1487 }
0x1b80   :  { %2410 = vmatmul.mubr.msk.f32.vlgmr.msra.gmra.mrb[14].mxu1 %vm186_vm2, %v1488_v18 }
0x1b81   :  { %2559 = vmatpush3.bf16.msra.mxu1 %v2963_v52  ;;  %2431 = vmatprep.mubr.msk.f32.mxu1 %vm2715_vm1, %v2716_v4 }
0x1b82   :  { %2560 = vmatprep.subr.bf16.mxu1 %v2714_v0 }
0x1b85   :  { %2562 = vmatpush3.bf16.msra.mxu1 %v2973_v55 }
0x1b86   :  { %2569 = vmatprep.subr.bf16.mxu1 %v2714_v0 }
0x1c53   :  { %v1557_v20 = vpop.f32.mrb[14].mxu1 }
0x1c54   :  { %v1561_v21 = vadd.f32 %v1557_v20, %v1156_v19  ;;  %v2411_v22 = vpop.f32.mrb[15].mxu1 }
0x1c56   :  { %2674 = vtanh.f32 %v1561_v21  ;;  %v2126_v24 = vmul.f32 -1.442695, %v1561_v21 }
0x1c58   :  { %2676 = vpow2.f32 %v2126_v24 }
0x1c60   :  { %v2675_v23 = vpop.eup %2674 }
0x1c61   :  { %1571 = vrot.lane.b32.xlu0 %v2675_v23, %s2717_s18 }
0x1c62   :  { %v2677_v25 = vpop.eup %2676 }
0x1c63   :  { %v1565_v26 = vadd.f32 1.0, %v2677_v25 }
0x1c65   :  { %2678 = vrcp.f32 %v1565_v26 }
0x1c6f   :  { %v2679_v27 = vpop.eup %2678 }
0x1c70   :  { %v1569_v30 = vmul.f32 %v2679_v27, %v1478_v38  ;;  %v1171_v38 = vadd.f32 %v2999_v8, %v3028_v58 }
0x1cd3   :  { %v1572_v28 = vpop.permute.xlu0 %1571 }
0x1cd4   :  { %v1574_v29 = vmul.f32 %v2679_v27, %v1572_v28 }
0x1cd6   :  { %1576 = vrot.lane.b32.xlu1 %v1574_v29, %s2717_s18 }
0x1d48   :  { %v1577_v31 = vpop.permute.xlu1 %1576 }
0x1d49   :  { %v1579_v36 = vadd.f32 %v1577_v31, %v1569_v30  ;;  %v1176_v30 = vadd.f32 %v3026_v56, %v2999_v8  ;;  %v1990_v56 = vld [vmem:[%s3124_s5] sm:$0xff] }
0x1d4b   :  { %2680 = vtanh.f32 %v1579_v36 }
0x1d55   :  { %v2681_v32 = vpop.eup %2680 }
0x1d56   :  { %1582 = vrot.lane.b32.xlu0 %v2681_v32, %s2717_s18 }
0x1dc8   :  { %v1583_v33 = vpop.permute.xlu0 %1582 }
0x1dc9   :  { %v1585_v35 = vmul.f32 %v2679_v27, %v1583_v33 }
0x1dcb   :  { %1588 = vrot.lane.b32.xlu1 %v1585_v35, %s2718_s19 }
0x1e3d   :  { %v1589_v37 = vpop.permute.xlu1 %1588 }
0x1e3e   :  { %2421 = vmatmul.mubr.msk.f32.vlgmr.msra.gmra.mrb[24].mxu0 %vm186_vm2, %v1589_v37 }
0x1e3f   :  { %2565 = vmatpush3.bf16.msra.mxu0 %v2963_v52  ;;  %2442 = vmatprep.mubr.msk.f32.mxu0 %vm2715_vm1, %v2716_v4 }
0x1e40   :  { %2566 = vmatprep.subr.bf16.mxu0 %v2714_v0 }
0x1e43   :  { %2568 = vmatpush3.bf16.msra.mxu0 %v2973_v55 }
0x1e44   :  { %2575 = vmatprep.subr.bf16.mxu0 %v2714_v0 }
0x1f11   :  { %v1658_v62 = vpop.f32.mrb[24].mxu0 }
0x1f12   :  { %v1662_v42 = vadd.f32 %v1658_v62, %v1161_v41  ;;  %v2422_v43 = vpop.f32.mrb[25].mxu0 }
0x1f14   :  { %2682 = vtanh.f32 %v1662_v42  ;;  %v2128_v45 = vmul.f32 -1.442695, %v1662_v42 }
0x1f16   :  { %2684 = vpow2.f32 %v2128_v45 }
0x1f1e   :  { %v2683_v44 = vpop.eup %2682 }
0x1f1f   :  { %1672 = vrot.lane.b32.xlu0 %v2683_v44, %s2717_s18 }
0x1f20   :  { %v2685_v46 = vpop.eup %2684 }
0x1f21   :  { %v1666_v47 = vadd.f32 1.0, %v2685_v46  ;;  %v1991_v46 = vld [vmem:[%s3124_s5 + $0x8] sm:$0xff] }
0x1f23   :  { %2686 = vrcp.f32 %v1666_v47  ;;  %v1992_v47 = vld [vmem:[%s3124_s5 + $0x10] sm:$0xff] }
0x1f2d   :  { %v2687_v34 = vpop.eup %2686 }
0x1f2e   :  { %v1670_v50 = vmul.f32 %v2687_v34, %v1579_v36 }
0x1f91   :  { %v1673_v48 = vpop.permute.xlu0 %1672 }
0x1f92   :  { %v1675_v49 = vmul.f32 %v2687_v34, %v1673_v48  ;;  %v1993_v48 = vld [vmem:[%s3124_s5 + $0x18] sm:$0xff] }
0x1f94   :  { %1677 = vrot.lane.b32.xlu1 %v1675_v49, %s2717_s18  ;;  %v2579_v49 = vpack.c.bf16 %v1993_v48, %v1992_v47 }
0x2006   :  { %v1678_v51 = vpop.permute.xlu1 %1677 }
0x2007   :  { %v1680_v40 = vadd.f32 %v1678_v51, %v1670_v50 }
0x2009   :  { %2688 = vtanh.f32 %v1680_v40 }
0x2013   :  { %v2689_v53 = vpop.eup %2688 }
0x2014   :  { %1683 = vrot.lane.b32.xlu0 %v2689_v53, %s2717_s18 }
0x2086   :  { %v1684_v54 = vpop.permute.xlu0 %1683 }
0x2087   :  { %v1686_v57 = vmul.f32 %v2687_v34, %v1684_v54  ;;  %v2576_v34 = vpack.c.bf16 %v1991_v46, %v1990_v56  ;;  %v2135_v54 = vld [vmem:[%s3125_s6] ss:$0 sm:$0xff] }
0x2089   :  { %1689 = vrot.lane.b32.xlu1 %v1686_v57, %s2718_s19 }
0x20fb   :  { %v1690_v60 = vpop.permute.xlu1 %1689 }
0x20fc   :  { %2432 = vmatmul.mubr.msk.f32.vlgmr.msra.gmra.mrb[16].mxu1 %vm186_vm2, %v1690_v60 }
0x20fd   :  { %2571 = vmatpush3.bf16.msra.mxu1 %v2963_v52  ;;  %2453 = vmatprep.mubr.msk.f32.mxu1 %vm2715_vm1, %v2716_v4 }
0x20fe   :  { %2572 = vmatprep.subr.bf16.mxu1 %v2714_v0 }
0x2101   :  { %2574 = vmatpush3.bf16.msra.mxu1 %v2973_v55 }
0x21cf   :  { %v1759_v1 = vpop.f32.mrb[16].mxu1 }
0x21d0   :  { %v1763_v2 = vadd.f32 %v1759_v1, %v1166_v63  ;;  %v2433_v3 = vpop.f32.mrb[17].mxu1 }
0x21d2   :  { %2690 = vtanh.f32 %v1763_v2  ;;  %v2130_v6 = vmul.f32 -1.442695, %v1763_v2 }
0x21d4   :  { %2692 = vpow2.f32 %v2130_v6 }
0x21dc   :  { %v2691_v5 = vpop.eup %2690 }
0x21dd   :  { %1773 = vrot.lane.b32.xlu0 %v2691_v5, %s2717_s18 }
0x21de   :  { %v2693_v52 = vpop.eup %2692 }
0x21df   :  { %v1767_v7 = vadd.f32 1.0, %v2693_v52 }
0x21e1   :  { %2694 = vrcp.f32 %v1767_v7 }
0x21eb   :  { %v2695_v9 = vpop.eup %2694 }
0x21ec   :  { %v1771_v55 = vmul.f32 %v2695_v9, %v1680_v40 }
0x224f   :  { %v1774_v12 = vpop.permute.xlu0 %1773 }
0x2250   :  { %v1776_v10 = vmul.f32 %v2695_v9, %v1774_v12 }
0x2252   :  { %1778 = vrot.lane.b32.xlu1 %v1776_v10, %s2717_s18 }
0x22c4   :  { %v1779_v13 = vpop.permute.xlu1 %1778 }
0x22c5   :  { %v1781_v39 = vadd.f32 %v1779_v13, %v1771_v55 }
0x22c7   :  { %2696 = vtanh.f32 %v1781_v39 }
0x22d1   :  { %v2697_v61 = vpop.eup %2696 }
0x22d2   :  { %1784 = vrot.lane.b32.xlu0 %v2697_v61, %s2717_s18 }
0x2344   :  { %v1785_v11 = vpop.permute.xlu0 %1784 }
0x2345   :  { %v1787_v59 = vmul.f32 %v2695_v9, %v1785_v11 }
0x2347   :  { %1790 = vrot.lane.b32.xlu1 %v1787_v59, %s2718_s19 }
0x23b9   :  { %v1791_v14 = vpop.permute.xlu1 %1790 }
0x23ba   :  { %2443 = vmatmul.mubr.msk.f32.vlgmr.msra.gmra.mrb[26].mxu0 %vm186_vm2, %v1791_v14 }
0x23bb   :  { %2464 = vmatprep.mubr.msk.f32.mxu0 %vm2715_vm1, %v2716_v4  ;;  %2577 = vmatpush3.bf16.msra.mxu0 %v2576_v34 }
0x23bc   :  { %2578 = vmatprep.subr.bf16.mxu0 %v2714_v0 }
0x23bf   :  { %2580 = vmatpush3.bf16.msra.mxu0 %v2579_v49 }
0x248d   :  { %v1860_v15 = vpop.f32.mrb[26].mxu0 }
0x248e   :  { %v1864_v16 = vadd.f32 %v1860_v15, %v1171_v38  ;;  %v2444_v17 = vpop.f32.mrb[27].mxu0 }
0x2490   :  { %2698 = vtanh.f32 %v1864_v16  ;;  %v2132_v19 = vmul.f32 -1.442695, %v1864_v16 }
0x2492   :  { %2700 = vpow2.f32 %v2132_v19 }
0x249a   :  { %v2699_v18 = vpop.eup %2698 }
0x249b   :  { %1874 = vrot.lane.b32.xlu0 %v2699_v18, %s2717_s18 }
0x249c   :  { %v2701_v20 = vpop.eup %2700 }
0x249d   :  { %v1868_v21 = vadd.f32 1.0, %v2701_v20 }
0x249f   :  { %2702 = vrcp.f32 %v1868_v21 }
0x24a9   :  { %v2703_v22 = vpop.eup %2702 }
0x24aa   :  { %v1872_v4 = vmul.f32 %v2703_v22, %v1781_v39 }
0x250d   :  { %v1875_v23 = vpop.permute.xlu0 %1874 }
0x250e   :  { %v1877_v24 = vmul.f32 %v2703_v22, %v1875_v23 }
0x2510   :  { %1879 = vrot.lane.b32.xlu1 %v1877_v24, %s2717_s18 }
0x2582   :  { %v1880_v25 = vpop.permute.xlu1 %1879 }
0x2583   :  { %v1882_v58 = vadd.f32 %v1880_v25, %v1872_v4 }
0x2585   :  { %2704 = vtanh.f32 %v1882_v58 }
0x258f   :  { %v2705_v26 = vpop.eup %2704 }
0x2590   :  { %1885 = vrot.lane.b32.xlu0 %v2705_v26, %s2717_s18 }
0x2602   :  { %v1886_v27 = vpop.permute.xlu0 %1885 }
0x2603   :  { %v1888_v28 = vmul.f32 %v2703_v22, %v1886_v27 }
0x2605   :  { %1891 = vrot.lane.b32.xlu1 %v1888_v28, %s2718_s19 }
0x2677   :  { %v1892_v29 = vpop.permute.xlu1 %1891 }
0x2678   :  { %2454 = vmatmul.mubr.msk.f32.vlgmr.msra.gmra.mrb[18].mxu1 %vm186_vm2, %v1892_v29 }
0x274b   :  { %v1961_v31 = vpop.f32.mrb[18].mxu1 }
0x274c   :  { %v1965_v36 = vadd.f32 %v1961_v31, %v1176_v30  ;;  %v2455_v32 = vpop.f32.mrb[19].mxu1 }
0x274e   :  { %2706 = vtanh.f32 %v1965_v36  ;;  %v2134_v35 = vmul.f32 -1.442695, %v1965_v36 }
0x2750   :  { %2708 = vpow2.f32 %v2134_v35 }
0x2758   :  { %v2707_v33 = vpop.eup %2706 }
0x2759   :  { %1975 = vrot.lane.b32.xlu0 %v2707_v33, %s2717_s18 }
0x275a   :  { %v2709_v37 = vpop.eup %2708 }
0x275b   :  { %v1969_v41 = vadd.f32 1.0, %v2709_v37 }
0x275d   :  { %2710 = vrcp.f32 %v1969_v41 }
0x2767   :  { %v2711_v62 = vpop.eup %2710 }
0x2768   :  { %v1973_v44 = vmul.f32 %v2711_v62, %v1882_v58 }
0x27cb   :  { %v1976_v42 = vpop.permute.xlu0 %1975 }
0x27cc   :  { %v1978_v43 = vmul.f32 %v2711_v62, %v1976_v42 }
0x27ce   :  { %1980 = vrot.lane.b32.xlu1 %v1978_v43, %s2717_s18 }
0x2840   :  { %v1981_v45 = vpop.permute.xlu1 %1980 }
0x2841   :  { %v1983_v8 = vadd.f32 %v1981_v45, %v1973_v44 }
0x2843   :  { %2712 = vtanh.f32 %v1983_v8 }
0x284d   :  { %v2713_v50 = vpop.eup %2712 }
0x284e   :  { %1986 = vrot.lane.b32.xlu0 %v2713_v50, %s2717_s18 }
0x28c0   :  { %v1987_v51 = vpop.permute.xlu0 %1986 }
0x28c1   :  { %v1989_v40 = vmul.f32 %v2711_v62, %v1987_v51 }
0x28c3   :  { %2002 = vrot.lane.b32.xlu1 %v1989_v40, %s2718_s19 }
0x2935   :  { %v2003_v53 = vpop.permute.xlu1 %2002 }
0x2936   :  { %2465 = vmatmul.mubr.msk.f32.vlgmr.msra.gmra.mrb[28].mxu0 %vm186_vm2, %v2003_v53 }
0x2a09   :  { %v2072_v57 = vpop.f32.mrb[28].mxu0 }
0x2a0a   :  { %v2073_v60 = vadd.f32 %v2135_v54, %v2072_v57  ;;  %v2466_v63 = vpop.f32.mrb[29].mxu0 }
0x2a0c   :  { %2077 = vst.msk [vmem:[%s3126_s7] sm:$0xff] %vm2076_vm3, %v2073_v60 }

</bundles_post_ra>
